<compile_context>
chip_gen: v7x
topology: tpu7x:2x2x1
jax: 0.10.0
libtpu: 0.0.40
codegen_flags: <defaults>
</compile_context>

<pallas_src>
import math
import functools

import jax
import jax.numpy as jnp
from jax import lax
from jax.experimental import pallas as pl
from jax.experimental.pallas import tpu as pltpu

EPS = 1e-6


def _layernorm(x, alpha, beta):
    """LayerNorm matching model.py: mean over last dim, unbiased std, eps on std.

    Fused single-pass reduction: sum(x) and sum(x*x) computed together, which
    halves the cross-lane XLU reductions vs. mean-then-centered-variance.
    """
    n = x.shape[-1]
    s = jnp.sum(x, axis=-1, keepdims=True)
    ss = jnp.sum(x * x, axis=-1, keepdims=True)
    mean = s * (1.0 / n)
    var = (ss - n * mean * mean) * (1.0 / (n - 1))
    var = jnp.maximum(var, 0.0)
    std = jnp.sqrt(var)
    inv = pl.reciprocal(std + EPS, approx=True)     # EUP slot, nearly free
    return alpha * (x - mean) * inv + beta


def encoder_block_kernel(ln_ref,                      # SMEM (4,): a1,b1,a2,b2
                         wq_ref, bq_ref, wk_ref, bk_ref,
                         wv_ref, bv_ref, wo_ref, bo_ref,
                         w1_ref, b1_ref, w2_ref, b2_ref,
                         x_ref, o_ref,
                         k_sc, v_sc,
                         *, n_heads, tq):
    qt = pl.program_id(1)
    S = x_ref.shape[1]
    D = x_ref.shape[2]
    d_k = D // n_heads
    scale = 1.0 / math.sqrt(d_k)

    a1, b1 = ln_ref[0], ln_ref[1]
    a2, b2 = ln_ref[2], ln_ref[3]

    # ---- once per batch element: project K / V for the whole sequence ----
    @pl.when(qt == 0)
    def _():
        x_all = x_ref[0].astype(jnp.float32)                       # (S, D)
        n1_all = _layernorm(x_all, a1, b1).astype(jnp.bfloat16)
        k = jnp.dot(n1_all, wk_ref[...],
                    preferred_element_type=jnp.float32) + bk_ref[0]
        v = jnp.dot(n1_all, wv_ref[...],
                    preferred_element_type=jnp.float32) + bv_ref[0]
        k_sc[...] = k.astype(jnp.bfloat16)
        v_sc[...] = v.astype(jnp.bfloat16)

    # ---- per query row-tile ----
    row0 = pl.multiple_of(qt * tq, tq)
    x_t = x_ref[0, pl.ds(row0, tq), :].astype(jnp.float32)          # (tq, D)

    # residual connection 1: x + SelfAttn(LN(x))   (dropout = identity)
    n1_t = _layernorm(x_t, a1, b1).astype(jnp.bfloat16)
    q = jnp.dot(n1_t, wq_ref[...],
                preferred_element_type=jnp.float32) + bq_ref[0]
    q_bf = (q * scale).astype(jnp.bfloat16)      # fold 1/sqrt(d_k) into Q once

    k_all = k_sc[...]                                               # (S, D) bf16
    v_all = v_sc[...]                                               # (S, D) bf16

    # Static per-head loop: lane-contiguous column slices, dot_general
    # contracting last dims (no transposes, no reshape relayouts).
    ctx_heads = []
    for h in range(n_heads):
        lo = h * d_k
        qh = q_bf[:, lo:lo + d_k]                                   # (tq, d_k)
        kh = k_all[:, lo:lo + d_k]                                  # (S,  d_k)
        vh = v_all[:, lo:lo + d_k]                                  # (S,  d_k)
        s = lax.dot_general(qh, kh, (((1,), (1,)), ((), ())),
                            preferred_element_type=jnp.float32)     # (tq, S)
        s = s - jnp.max(s, axis=-1, keepdims=True)
        p = jnp.exp(s)
        p = p * pl.reciprocal(jnp.sum(p, axis=-1, keepdims=True), approx=True)
        ctx_heads.append(jnp.dot(p.astype(jnp.bfloat16), vh,
                                 preferred_element_type=jnp.float32))
    ctx = jnp.concatenate(ctx_heads, axis=-1)                       # (tq, D) f32

    attn_out = jnp.dot(ctx.astype(jnp.bfloat16), wo_ref[...],
                       preferred_element_type=jnp.float32) + bo_ref[0]
    y1 = x_t + attn_out

    # residual connection 2: y1 + FFN(LN(y1))      (dropout = identity)
    n2 = _layernorm(y1, a2, b2).astype(jnp.bfloat16)
    h1 = jnp.dot(n2, w1_ref[...],
                 preferred_element_type=jnp.float32) + b1_ref[0]
    h1 = jnp.maximum(h1, 0.0).astype(jnp.bfloat16)
    ffn = jnp.dot(h1, w2_ref[...],
                  preferred_element_type=jnp.float32) + b2_ref[0]

    o_ref[0] = (y1 + ffn).astype(o_ref.dtype)


def _pick_tq(S):
    """Query row-tile: full sequence if small, else a multiple-of-8 divisor."""
    if S <= 256:
        return S
    for t in (256, 128, 64, 32, 16, 8):
        if S % t == 0:
            return t
    # TODO(synk): pad ragged sequence lengths to a multiple of 8.
    return S


def encoder_block(x, params, n_heads):
    """x: (B, S, D) float32. Weights are (in, out) laid out, bf16; biases f32."""
    B, S, D = x.shape
    d_ff = params['w1'].shape[1]
    tq = _pick_tq(S)
    assert S % tq == 0
    nq = S // tq

    full = lambda shape: pl.BlockSpec(shape, lambda b, q: (0,) * len(shape))
    kernel = functools.partial(encoder_block_kernel, n_heads=n_heads, tq=tq)

    # --- VMEM budget: 2x-buffered inputs + K/V scratch + intermediates ------
    w_bytes = 2 * 2 * (4 * D * D + 2 * D * d_ff)          # bf16, 2 buffers
    b_bytes = 2 * 4 * (5 * D + d_ff)                      # f32 biases, 2 buffers
    x_bytes = 2 * 4 * S * D                               # f32 x block
    o_bytes = 2 * 4 * tq * D
    sc_bytes = 2 * 2 * S * D                              # bf16 K, V scratch
    interm = 4 * (tq * S + tq * d_ff + 4 * tq * D)
    vmem_limit = int(min(w_bytes + b_bytes + x_bytes + o_bytes + sc_bytes
                         + interm + (16 << 20), 64 << 20))

    flops = 2 * B * S * D * (4 * D + 2 * d_ff) + 4 * B * S * S * D
    cost = pl.CostEstimate(
        flops=int(flops),
        transcendentals=int(B * n_heads * S * S),
        bytes_accessed=int(w_bytes // 2 + 2 * 4 * B * S * D))

    return pl.pallas_call(
        kernel,
        out_shape=jax.ShapeDtypeStruct((B, S, D), x.dtype),
        grid_spec=pltpu.PrefetchScalarGridSpec(
            num_scalar_prefetch=0,
            grid=(B, nq),
            in_specs=[
                pl.BlockSpec(memory_space=pltpu.MemorySpace.SMEM),  # ln scalars
                full((D, D)), full((1, D)),        # w_q, b_q
                full((D, D)), full((1, D)),        # w_k, b_k
                full((D, D)), full((1, D)),        # w_v, b_v
                full((D, D)), full((1, D)),        # w_o, b_o
                full((D, d_ff)), full((1, d_ff)),  # linear1
                full((d_ff, D)), full((1, D)),     # linear2
                pl.BlockSpec((1, S, D), lambda b, q: (b, 0, 0)),    # x (full seq)
            ],
            out_specs=pl.BlockSpec((1, tq, D), lambda b, q: (b, q, 0)),
            scratch_shapes=[pltpu.VMEM((S, D), jnp.bfloat16),       # K scratch
                            pltpu.VMEM((S, D), jnp.bfloat16)],      # V scratch
        ),
        compiler_params=pltpu.CompilerParams(
            dimension_semantics=("parallel", "arbitrary"),
            vmem_limit_bytes=vmem_limit),
        cost_estimate=cost,
    )(params['ln'],
      params['wq'], params['bq'], params['wk'], params['bk'],
      params['wv'], params['bv'], params['wo'], params['bo'],
      params['w1'], params['b1'], params['w2'], params['b2'],
      x)


# ---------------- pure-JAX f32 reference (for verification) ----------------
def encoder_block_ref(x, params, n_heads):
    B, S, D = x.shape
    d_k = D // n_heads
    f32 = lambda a: a.astype(jnp.float32)
    wq, wk = f32(params['wq']), f32(params['wk'])
    wv, wo = f32(params['wv']), f32(params['wo'])
    w1, w2 = f32(params['w1']), f32(params['w2'])
    bq, bk = params['bq'][0], params['bk'][0]
    bv, bo = params['bv'][0], params['bo'][0]
    b1, b2 = params['b1'][0], params['b2'][0]
    a1, be1, a2, be2 = [params['ln'][i] for i in range(4)]

    def ln(t, a, b):
        mean = jnp.mean(t, -1, keepdims=True)
        var = jnp.sum((t - mean) ** 2, -1, keepdims=True) / (D - 1)
        return a * (t - mean) / (jnp.sqrt(var) + EPS) + b

    n1 = ln(x, a1, be1)
    q = n1 @ wq + bq
    k = n1 @ wk + bk
    v = n1 @ wv + bv
    qh = q.reshape(B, S, n_heads, d_k).transpose(0, 2, 1, 3)
    kh = k.reshape(B, S, n_heads, d_k).transpose(0, 2, 1, 3)
    vh = v.reshape(B, S, n_heads, d_k).transpose(0, 2, 1, 3)
    scores = (qh @ kh.transpose(0, 1, 3, 2)) / math.sqrt(d_k)
    p = jax.nn.softmax(scores, axis=-1)
    ctx = (p @ vh).transpose(0, 2, 1, 3).reshape(B, S, D)
    y1 = x + (ctx @ wo + bo)

    n2 = ln(y1, a2, be2)
    h = jnp.maximum(n2 @ w1 + b1, 0.0)
    return y1 + (h @ w2 + b2)


def init_params(key, d_model, d_ff):
    ks = jax.random.split(key, 12)

    def lin(kw, kb, fan_in, fan_out):
        bound = 1.0 / math.sqrt(fan_in)
        w = jax.random.uniform(kw, (fan_in, fan_out), jnp.float32, -bound, bound)
        b = jax.random.uniform(kb, (1, fan_out), jnp.float32, -bound, bound)
        return w.astype(jnp.bfloat16), b     # weights bf16, biases f32

    wq, bq = lin(ks[0], ks[1], d_model, d_model)
    wk, bk = lin(ks[2], ks[3], d_model, d_model)
    wv, bv = lin(ks[4], ks[5], d_model, d_model)
    wo, bo = lin(ks[6], ks[7], d_model, d_model)
    w1, b1 = lin(ks[8], ks[9], d_model, d_ff)
    w2, b2 = lin(ks[10], ks[11], d_ff, d_model)
    # LayerNorm params: alpha = 1, beta = 0 (two LayerNorms).
    ln = jnp.array([1.0, 0.0, 1.0, 0.0], jnp.float32)
    return dict(ln=ln, wq=wq, bq=bq, wk=wk, bk=bk, wv=wv, bv=bv,
                wo=wo, bo=bo, w1=w1, b1=b1, w2=w2, b2=b2)


if __name__ == "__main__":
    B, S, D, H, DFF = 2, 8, 32, 4, 64
    key = jax.random.PRNGKey(0)
    kx, kp = jax.random.split(key)
    x = jax.random.normal(kx, (B, S, D), jnp.float32)
    params = init_params(kp, D, DFF)

    out = jax.block_until_ready(encoder_block(x, params, n_heads=H))
    ref = encoder_block_ref(x, params, n_heads=H)

    assert out.shape == (B, S, D)
    max_err = float(jnp.max(jnp.abs(out - ref)))
    # bf16 matmul inputs + approx reciprocals vs. pure-f32 reference.
    assert jnp.allclose(out, ref, rtol=5e-2, atol=5e-2), \
        f"mismatch vs reference (max abs err {max_err})"

    print("KERNEL_OK")
</pallas_src>

<mosaic_0001>
module attributes {stable_mosaic.version = 11 : i64} {
  func.func @encoder_block_kernel(%arg0: i32, %arg1: i32, %arg2: memref<4xf32, #tpu.memory_space<smem>>, %arg3: memref<32x32xbf16, #tpu.memory_space<vmem>>, %arg4: memref<1x32xf32, #tpu.memory_space<vmem>>, %arg5: memref<32x32xbf16, #tpu.memory_space<vmem>>, %arg6: memref<1x32xf32, #tpu.memory_space<vmem>>, %arg7: memref<32x32xbf16, #tpu.memory_space<vmem>>, %arg8: memref<1x32xf32, #tpu.memory_space<vmem>>, %arg9: memref<32x32xbf16, #tpu.memory_space<vmem>>, %arg10: memref<1x32xf32, #tpu.memory_space<vmem>>, %arg11: memref<32x64xbf16, #tpu.memory_space<vmem>>, %arg12: memref<1x64xf32, #tpu.memory_space<vmem>>, %arg13: memref<64x32xbf16, #tpu.memory_space<vmem>>, %arg14: memref<1x32xf32, #tpu.memory_space<vmem>>, %arg15: memref<1x8x32xf32, #tpu.memory_space<vmem>>, %arg16: memref<1x8x32xf32, #tpu.memory_space<vmem>>, %arg17: memref<8x32xbf16, #tpu.memory_space<vmem>>, %arg18: memref<8x32xbf16, #tpu.memory_space<vmem>>) attributes {dimension_semantics = [#tpu.dimension_semantics<parallel>, #tpu.dimension_semantics<arbitrary>], iteration_bounds = array<i64: 2, 1>, scalar_prefetch = 0 : i64, scratch_operands = 2 : i64, tpu.core_type = #tpu.core_type<tc>, window_params = [{transform_indices = @transform_0, window_bounds = array<i64: 4>}, {pipeline_mode = #tpu.pipeline_mode<synchronous>, transform_indices = @transform_1, window_bounds = array<i64: 32, 32>}, {pipeline_mode = #tpu.pipeline_mode<synchronous>, transform_indices = @transform_2, window_bounds = array<i64: 1, 32>}, {pipeline_mode = #tpu.pipeline_mode<synchronous>, transform_indices = @transform_3, window_bounds = array<i64: 32, 32>}, {pipeline_mode = #tpu.pipeline_mode<synchronous>, transform_indices = @transform_4, window_bounds = array<i64: 1, 32>}, {pipeline_mode = #tpu.pipeline_mode<synchronous>, transform_indices = @transform_5, window_bounds = array<i64: 32, 32>}, {pipeline_mode = #tpu.pipeline_mode<synchronous>, transform_indices = @transform_6, window_bounds = array<i64: 1, 32>}, {pipeline_mode = #tpu.pipeline_mode<synchronous>, transform_indices = @transform_7, window_bounds = array<i64: 32, 32>}, {pipeline_mode = #tpu.pipeline_mode<synchronous>, transform_indices = @transform_8, window_bounds = array<i64: 1, 32>}, {pipeline_mode = #tpu.pipeline_mode<synchronous>, transform_indices = @transform_9, window_bounds = array<i64: 32, 64>}, {pipeline_mode = #tpu.pipeline_mode<synchronous>, transform_indices = @transform_10, window_bounds = array<i64: 1, 64>}, {pipeline_mode = #tpu.pipeline_mode<synchronous>, transform_indices = @transform_11, window_bounds = array<i64: 64, 32>}, {pipeline_mode = #tpu.pipeline_mode<synchronous>, transform_indices = @transform_12, window_bounds = array<i64: 1, 32>}, {transform_indices = @transform_13, window_bounds = array<i64: 1, 8, 32>}, {transform_indices = @transform_14, window_bounds = array<i64: 1, 8, 32>}]} {
    %c0 = arith.constant 0 : index
    %0 = memref.load %arg2[%c0] : memref<4xf32, #tpu.memory_space<smem>>
    %c1 = arith.constant 1 : index
    %1 = memref.load %arg2[%c1] : memref<4xf32, #tpu.memory_space<smem>>
    %c2 = arith.constant 2 : index
    %2 = memref.load %arg2[%c2] : memref<4xf32, #tpu.memory_space<smem>>
    %c3 = arith.constant 3 : index
    %3 = memref.load %arg2[%c3] : memref<4xf32, #tpu.memory_space<smem>>
    %c0_i32 = arith.constant 0 : i32
    %4 = arith.cmpi eq, %arg1, %c0_i32 : i32
    %5 = arith.extui %4 : i1 to i32
    %c0_i32_0 = arith.constant 0 : i32
    %6 = arith.cmpi ne, %5, %c0_i32_0 : i32
    scf.if %6 {
      %c0_61 = arith.constant 0 : index
      %c0_62 = arith.constant 0 : index
      %c0_63 = arith.constant 0 : index
      %175 = vector.load %arg15[%c0_61, %c0_62, %c0_63] : memref<1x8x32xf32, #tpu.memory_space<vmem>>, vector<1x8x32xf32>
      %176 = vector.shape_cast %175 : vector<1x8x32xf32> to vector<8x32xf32>
      %cst_64 = arith.constant dense<0.000000e+00> : vector<8xf32>
      %177 = vector.multi_reduction <add>, %176, %cst_64 [1] : vector<8x32xf32> to vector<8xf32>
      %178 = vector.shape_cast %177 : vector<8xf32> to vector<8x1xf32>
      %179 = arith.mulf %176, %176 : vector<8x32xf32>
      %cst_65 = arith.constant dense<0.000000e+00> : vector<8xf32>
      %180 = vector.multi_reduction <add>, %179, %cst_65 [1] : vector<8x32xf32> to vector<8xf32>
      %181 = vector.shape_cast %180 : vector<8xf32> to vector<8x1xf32>
      %cst_66 = arith.constant 3.125000e-02 : f32
      %182 = vector.broadcast %cst_66 : f32 to vector<8x1xf32>
      %183 = arith.mulf %178, %182 : vector<8x1xf32>
      %cst_67 = arith.constant 3.200000e+01 : f32
      %184 = vector.broadcast %cst_67 : f32 to vector<8x1xf32>
      %185 = arith.mulf %184, %183 : vector<8x1xf32>
      %186 = arith.mulf %185, %183 : vector<8x1xf32>
      %187 = arith.subf %181, %186 : vector<8x1xf32>
      %cst_68 = arith.constant 0.0322580636 : f32
      %188 = vector.broadcast %cst_68 : f32 to vector<8x1xf32>
      %189 = arith.mulf %187, %188 : vector<8x1xf32>
      %cst_69 = arith.constant 0.000000e+00 : f32
      %190 = vector.broadcast %cst_69 : f32 to vector<8x1xf32>
      %191 = arith.maximumf %189, %190 : vector<8x1xf32>
      %192 = math.sqrt %191 : vector<8x1xf32>
      %cst_70 = arith.constant 9.99999997E-7 : f32
      %193 = vector.broadcast %cst_70 : f32 to vector<8x1xf32>
      %194 = arith.addf %192, %193 : vector<8x1xf32>
      %195 = tpu.reciprocal %194 {approx = true} : vector<8x1xf32> -> vector<8x1xf32>
      %196 = vector.broadcast %183 : vector<8x1xf32> to vector<8x32xf32>
      %197 = arith.subf %176, %196 : vector<8x32xf32>
      %198 = vector.broadcast %0 : f32 to vector<8x32xf32>
      %199 = arith.mulf %198, %197 : vector<8x32xf32>
      %200 = vector.broadcast %195 : vector<8x1xf32> to vector<8x32xf32>
      %201 = arith.mulf %199, %200 : vector<8x32xf32>
      %202 = vector.broadcast %1 : f32 to vector<8x32xf32>
      %203 = arith.addf %201, %202 : vector<8x32xf32>
      %204 = arith.truncf %203 : vector<8x32xf32> to vector<8x32xbf16>
      %c0_71 = arith.constant 0 : index
      %c0_72 = arith.constant 0 : index
      %205 = vector.load %arg5[%c0_71, %c0_72] : memref<32x32xbf16, #tpu.memory_space<vmem>>, vector<32x32xbf16>
      %cst_73 = arith.constant dense<0.000000e+00> : vector<8x32xf32>
      %206 = tpu.matmul %204, %205, %cst_73 {dimension_numbers = #tpu.dot_dimension_numbers<[1], [0], [0], [1], [0, 0, 1, 1], [], []>} : vector<8x32xbf16>, vector<32x32xbf16>, vector<8x32xf32> -> vector<8x32xf32>
      %c0_74 = arith.constant 0 : index
      %c0_75 = arith.constant 0 : index
      %207 = vector.load %arg6[%c0_74, %c0_75] : memref<1x32xf32, #tpu.memory_space<vmem>>, vector<1x32xf32>
      %208 = vector.shape_cast %207 : vector<1x32xf32> to vector<32xf32>
      %209 = vector.shape_cast %208 : vector<32xf32> to vector<1x32xf32>
      %210 = vector.broadcast %209 : vector<1x32xf32> to vector<8x32xf32>
      %211 = arith.addf %206, %210 : vector<8x32xf32>
      %c0_76 = arith.constant 0 : index
      %c0_77 = arith.constant 0 : index
      %212 = vector.load %arg7[%c0_76, %c0_77] : memref<32x32xbf16, #tpu.memory_space<vmem>>, vector<32x32xbf16>
      %cst_78 = arith.constant dense<0.000000e+00> : vector<8x32xf32>
      %213 = tpu.matmul %204, %212, %cst_78 {dimension_numbers = #tpu.dot_dimension_numbers<[1], [0], [0], [1], [0, 0, 1, 1], [], []>} : vector<8x32xbf16>, vector<32x32xbf16>, vector<8x32xf32> -> vector<8x32xf32>
      %c0_79 = arith.constant 0 : index
      %c0_80 = arith.constant 0 : index
      %214 = vector.load %arg8[%c0_79, %c0_80] : memref<1x32xf32, #tpu.memory_space<vmem>>, vector<1x32xf32>
      %215 = vector.shape_cast %214 : vector<1x32xf32> to vector<32xf32>
      %216 = vector.shape_cast %215 : vector<32xf32> to vector<1x32xf32>
      %217 = vector.broadcast %216 : vector<1x32xf32> to vector<8x32xf32>
      %218 = arith.addf %213, %217 : vector<8x32xf32>
      %219 = arith.truncf %211 : vector<8x32xf32> to vector<8x32xbf16>
      %c0_81 = arith.constant 0 : index
      %c0_82 = arith.constant 0 : index
      %220 = vector.load %arg17[%c0_81, %c0_82] : memref<8x32xbf16, #tpu.memory_space<vmem>>, vector<8x32xbf16>
      tpu.vector_store %arg17[%c0_81, %c0_82], %219 {strides = array<i32>} : memref<8x32xbf16, #tpu.memory_space<vmem>>, vector<8x32xbf16>,
      %221 = arith.truncf %218 : vector<8x32xf32> to vector<8x32xbf16>
      %c0_83 = arith.constant 0 : index
      %c0_84 = arith.constant 0 : index
      %222 = vector.load %arg18[%c0_83, %c0_84] : memref<8x32xbf16, #tpu.memory_space<vmem>>, vector<8x32xbf16>
      tpu.vector_store %arg18[%c0_83, %c0_84], %221 {strides = array<i32>} : memref<8x32xbf16, #tpu.memory_space<vmem>>, vector<8x32xbf16>,
    } else {
    }
    %c8_i32 = arith.constant 8 : i32
    %7 = arith.muli %arg1, %c8_i32 : i32
    %8 = tpu.assume_multiple %7, 8 : i32
    %c0_1 = arith.constant 0 : index
    %9 = arith.index_cast %8 : i32 to index
    %c0_2 = arith.constant 0 : index
    %10 = vector.load %arg15[%c0_1, %9, %c0_2] : memref<1x8x32xf32, #tpu.memory_space<vmem>>, vector<1x8x32xf32>
    %11 = vector.shape_cast %10 : vector<1x8x32xf32> to vector<8x32xf32>
    %cst = arith.constant dense<0.000000e+00> : vector<8xf32>
    %12 = vector.multi_reduction <add>, %11, %cst [1] : vector<8x32xf32> to vector<8xf32>
    %13 = vector.shape_cast %12 : vector<8xf32> to vector<8x1xf32>
    %14 = arith.mulf %11, %11 : vector<8x32xf32>
    %cst_3 = arith.constant dense<0.000000e+00> : vector<8xf32>
    %15 = vector.multi_reduction <add>, %14, %cst_3 [1] : vector<8x32xf32> to vector<8xf32>
    %16 = vector.shape_cast %15 : vector<8xf32> to vector<8x1xf32>
    %cst_4 = arith.constant 3.125000e-02 : f32
    %17 = vector.broadcast %cst_4 : f32 to vector<8x1xf32>
    %18 = arith.mulf %13, %17 : vector<8x1xf32>
    %cst_5 = arith.constant 3.200000e+01 : f32
    %19 = vector.broadcast %cst_5 : f32 to vector<8x1xf32>
    %20 = arith.mulf %19, %18 : vector<8x1xf32>
    %21 = arith.mulf %20, %18 : vector<8x1xf32>
    %22 = arith.subf %16, %21 : vector<8x1xf32>
    %cst_6 = arith.constant 0.0322580636 : f32
    %23 = vector.broadcast %cst_6 : f32 to vector<8x1xf32>
    %24 = arith.mulf %22, %23 : vector<8x1xf32>
    %cst_7 = arith.constant 0.000000e+00 : f32
    %25 = vector.broadcast %cst_7 : f32 to vector<8x1xf32>
    %26 = arith.maximumf %24, %25 : vector<8x1xf32>
    %27 = math.sqrt %26 : vector<8x1xf32>
    %cst_8 = arith.constant 9.99999997E-7 : f32
    %28 = vector.broadcast %cst_8 : f32 to vector<8x1xf32>
    %29 = arith.addf %27, %28 : vector<8x1xf32>
    %30 = tpu.reciprocal %29 {approx = true} : vector<8x1xf32> -> vector<8x1xf32>
    %31 = vector.broadcast %18 : vector<8x1xf32> to vector<8x32xf32>
    %32 = arith.subf %11, %31 : vector<8x32xf32>
    %33 = vector.broadcast %0 : f32 to vector<8x32xf32>
    %34 = arith.mulf %33, %32 : vector<8x32xf32>
    %35 = vector.broadcast %30 : vector<8x1xf32> to vector<8x32xf32>
    %36 = arith.mulf %34, %35 : vector<8x32xf32>
    %37 = vector.broadcast %1 : f32 to vector<8x32xf32>
    %38 = arith.addf %36, %37 : vector<8x32xf32>
    %39 = arith.truncf %38 : vector<8x32xf32> to vector<8x32xbf16>
    %c0_9 = arith.constant 0 : index
    %c0_10 = arith.constant 0 : index
    %40 = vector.load %arg3[%c0_9, %c0_10] : memref<32x32xbf16, #tpu.memory_space<vmem>>, vector<32x32xbf16>
    %cst_11 = arith.constant dense<0.000000e+00> : vector<8x32xf32>
    %41 = tpu.matmul %39, %40, %cst_11 {dimension_numbers = #tpu.dot_dimension_numbers<[1], [0], [0], [1], [0, 0, 1, 1], [], []>} : vector<8x32xbf16>, vector<32x32xbf16>, vector<8x32xf32> -> vector<8x32xf32>
    %c0_12 = arith.constant 0 : index
    %c0_13 = arith.constant 0 : index
    %42 = vector.load %arg4[%c0_12, %c0_13] : memref<1x32xf32, #tpu.memory_space<vmem>>, vector<1x32xf32>
    %43 = vector.shape_cast %42 : vector<1x32xf32> to vector<32xf32>
    %44 = vector.shape_cast %43 : vector<32xf32> to vector<1x32xf32>
    %45 = vector.broadcast %44 : vector<1x32xf32> to vector<8x32xf32>
    %46 = arith.addf %41, %45 : vector<8x32xf32>
    %cst_14 = arith.constant 0.353553385 : f32
    %47 = vector.broadcast %cst_14 : f32 to vector<8x32xf32>
    %48 = arith.mulf %46, %47 : vector<8x32xf32>
    %49 = arith.truncf %48 : vector<8x32xf32> to vector<8x32xbf16>
    %c0_15 = arith.constant 0 : index
    %c0_16 = arith.constant 0 : index
    %50 = vector.load %arg17[%c0_15, %c0_16] : memref<8x32xbf16, #tpu.memory_space<vmem>>, vector<8x32xbf16>
    %c0_17 = arith.constant 0 : index
    %c0_18 = arith.constant 0 : index
    %51 = vector.load %arg18[%c0_17, %c0_18] : memref<8x32xbf16, #tpu.memory_space<vmem>>, vector<8x32xbf16>
    %52 = vector.extract_strided_slice %49 {offsets = [0, 0], sizes = [8, 8], strides = [1, 1]} : vector<8x32xbf16> to vector<8x8xbf16>
    %53 = vector.extract_strided_slice %50 {offsets = [0, 0], sizes = [8, 8], strides = [1, 1]} : vector<8x32xbf16> to vector<8x8xbf16>
    %54 = vector.extract_strided_slice %51 {offsets = [0, 0], sizes = [8, 8], strides = [1, 1]} : vector<8x32xbf16> to vector<8x8xbf16>
    %cst_19 = arith.constant dense<0.000000e+00> : vector<8x8xf32>
    %55 = tpu.matmul %52, %53, %cst_19 {dimension_numbers = #tpu.dot_dimension_numbers<[1], [1], [0], [0], [0, 0, 1, 0], [], []>} : vector<8x8xbf16>, vector<8x8xbf16>, vector<8x8xf32> -> vector<8x8xf32>
    %cst_20 = arith.constant dense<0xFF800000> : vector<8xf32>
    %56 = vector.multi_reduction <maximumf>, %55, %cst_20 [1] : vector<8x8xf32> to vector<8xf32>
    %57 = vector.shape_cast %56 : vector<8xf32> to vector<8x1xf32>
    %58 = vector.broadcast %57 : vector<8x1xf32> to vector<8x8xf32>
    %59 = arith.subf %55, %58 : vector<8x8xf32>
    %60 = math.exp %59 : vector<8x8xf32>
    %cst_21 = arith.constant dense<0.000000e+00> : vector<8xf32>
    %61 = vector.multi_reduction <add>, %60, %cst_21 [1] : vector<8x8xf32> to vector<8xf32>
    %62 = vector.shape_cast %61 : vector<8xf32> to vector<8x1xf32>
    %63 = tpu.reciprocal %62 {approx = true} : vector<8x1xf32> -> vector<8x1xf32>
    %64 = vector.broadcast %63 : vector<8x1xf32> to vector<8x8xf32>
    %65 = arith.mulf %60, %64 : vector<8x8xf32>
    %66 = arith.truncf %65 : vector<8x8xf32> to vector<8x8xbf16>
    %cst_22 = arith.constant dense<0.000000e+00> : vector<8x8xf32>
    %67 = tpu.matmul %66, %54, %cst_22 {dimension_numbers = #tpu.dot_dimension_numbers<[1], [0], [0], [1], [0, 0, 1, 1], [], []>} : vector<8x8xbf16>, vector<8x8xbf16>, vector<8x8xf32> -> vector<8x8xf32>
    %68 = vector.extract_strided_slice %49 {offsets = [0, 8], sizes = [8, 8], strides = [1, 1]} : vector<8x32xbf16> to vector<8x8xbf16>
    %69 = vector.extract_strided_slice %50 {offsets = [0, 8], sizes = [8, 8], strides = [1, 1]} : vector<8x32xbf16> to vector<8x8xbf16>
    %70 = vector.extract_strided_slice %51 {offsets = [0, 8], sizes = [8, 8], strides = [1, 1]} : vector<8x32xbf16> to vector<8x8xbf16>
    %cst_23 = arith.constant dense<0.000000e+00> : vector<8x8xf32>
    %71 = tpu.matmul %68, %69, %cst_23 {dimension_numbers = #tpu.dot_dimension_numbers<[1], [1], [0], [0], [0, 0, 1, 0], [], []>} : vector<8x8xbf16>, vector<8x8xbf16>, vector<8x8xf32> -> vector<8x8xf32>
    %cst_24 = arith.constant dense<0xFF800000> : vector<8xf32>
    %72 = vector.multi_reduction <maximumf>, %71, %cst_24 [1] : vector<8x8xf32> to vector<8xf32>
    %73 = vector.shape_cast %72 : vector<8xf32> to vector<8x1xf32>
    %74 = vector.broadcast %73 : vector<8x1xf32> to vector<8x8xf32>
    %75 = arith.subf %71, %74 : vector<8x8xf32>
    %76 = math.exp %75 : vector<8x8xf32>
    %cst_25 = arith.constant dense<0.000000e+00> : vector<8xf32>
    %77 = vector.multi_reduction <add>, %76, %cst_25 [1] : vector<8x8xf32> to vector<8xf32>
    %78 = vector.shape_cast %77 : vector<8xf32> to vector<8x1xf32>
    %79 = tpu.reciprocal %78 {approx = true} : vector<8x1xf32> -> vector<8x1xf32>
    %80 = vector.broadcast %79 : vector<8x1xf32> to vector<8x8xf32>
    %81 = arith.mulf %76, %80 : vector<8x8xf32>
    %82 = arith.truncf %81 : vector<8x8xf32> to vector<8x8xbf16>
    %cst_26 = arith.constant dense<0.000000e+00> : vector<8x8xf32>
    %83 = tpu.matmul %82, %70, %cst_26 {dimension_numbers = #tpu.dot_dimension_numbers<[1], [0], [0], [1], [0, 0, 1, 1], [], []>} : vector<8x8xbf16>, vector<8x8xbf16>, vector<8x8xf32> -> vector<8x8xf32>
    %84 = vector.extract_strided_slice %49 {offsets = [0, 16], sizes = [8, 8], strides = [1, 1]} : vector<8x32xbf16> to vector<8x8xbf16>
    %85 = vector.extract_strided_slice %50 {offsets = [0, 16], sizes = [8, 8], strides = [1, 1]} : vector<8x32xbf16> to vector<8x8xbf16>
    %86 = vector.extract_strided_slice %51 {offsets = [0, 16], sizes = [8, 8], strides = [1, 1]} : vector<8x32xbf16> to vector<8x8xbf16>
    %cst_27 = arith.constant dense<0.000000e+00> : vector<8x8xf32>
    %87 = tpu.matmul %84, %85, %cst_27 {dimension_numbers = #tpu.dot_dimension_numbers<[1], [1], [0], [0], [0, 0, 1, 0], [], []>} : vector<8x8xbf16>, vector<8x8xbf16>, vector<8x8xf32> -> vector<8x8xf32>
    %cst_28 = arith.constant dense<0xFF800000> : vector<8xf32>
    %88 = vector.multi_reduction <maximumf>, %87, %cst_28 [1] : vector<8x8xf32> to vector<8xf32>
    %89 = vector.shape_cast %88 : vector<8xf32> to vector<8x1xf32>
    %90 = vector.broadcast %89 : vector<8x1xf32> to vector<8x8xf32>
    %91 = arith.subf %87, %90 : vector<8x8xf32>
    %92 = math.exp %91 : vector<8x8xf32>
    %cst_29 = arith.constant dense<0.000000e+00> : vector<8xf32>
    %93 = vector.multi_reduction <add>, %92, %cst_29 [1] : vector<8x8xf32> to vector<8xf32>
    %94 = vector.shape_cast %93 : vector<8xf32> to vector<8x1xf32>
    %95 = tpu.reciprocal %94 {approx = true} : vector<8x1xf32> -> vector<8x1xf32>
    %96 = vector.broadcast %95 : vector<8x1xf32> to vector<8x8xf32>
    %97 = arith.mulf %92, %96 : vector<8x8xf32>
    %98 = arith.truncf %97 : vector<8x8xf32> to vector<8x8xbf16>
    %cst_30 = arith.constant dense<0.000000e+00> : vector<8x8xf32>
    %99 = tpu.matmul %98, %86, %cst_30 {dimension_numbers = #tpu.dot_dimension_numbers<[1], [0], [0], [1], [0, 0, 1, 1], [], []>} : vector<8x8xbf16>, vector<8x8xbf16>, vector<8x8xf32> -> vector<8x8xf32>
    %100 = vector.extract_strided_slice %49 {offsets = [0, 24], sizes = [8, 8], strides = [1, 1]} : vector<8x32xbf16> to vector<8x8xbf16>
    %101 = vector.extract_strided_slice %50 {offsets = [0, 24], sizes = [8, 8], strides = [1, 1]} : vector<8x32xbf16> to vector<8x8xbf16>
    %102 = vector.extract_strided_slice %51 {offsets = [0, 24], sizes = [8, 8], strides = [1, 1]} : vector<8x32xbf16> to vector<8x8xbf16>
    %cst_31 = arith.constant dense<0.000000e+00> : vector<8x8xf32>
    %103 = tpu.matmul %100, %101, %cst_31 {dimension_numbers = #tpu.dot_dimension_numbers<[1], [1], [0], [0], [0, 0, 1, 0], [], []>} : vector<8x8xbf16>, vector<8x8xbf16>, vector<8x8xf32> -> vector<8x8xf32>
    %cst_32 = arith.constant dense<0xFF800000> : vector<8xf32>
    %104 = vector.multi_reduction <maximumf>, %103, %cst_32 [1] : vector<8x8xf32> to vector<8xf32>
    %105 = vector.shape_cast %104 : vector<8xf32> to vector<8x1xf32>
    %106 = vector.broadcast %105 : vector<8x1xf32> to vector<8x8xf32>
    %107 = arith.subf %103, %106 : vector<8x8xf32>
    %108 = math.exp %107 : vector<8x8xf32>
    %cst_33 = arith.constant dense<0.000000e+00> : vector<8xf32>
    %109 = vector.multi_reduction <add>, %108, %cst_33 [1] : vector<8x8xf32> to vector<8xf32>
    %110 = vector.shape_cast %109 : vector<8xf32> to vector<8x1xf32>
    %111 = tpu.reciprocal %110 {approx = true} : vector<8x1xf32> -> vector<8x1xf32>
    %112 = vector.broadcast %111 : vector<8x1xf32> to vector<8x8xf32>
    %113 = arith.mulf %108, %112 : vector<8x8xf32>
    %114 = arith.truncf %113 : vector<8x8xf32> to vector<8x8xbf16>
    %cst_34 = arith.constant dense<0.000000e+00> : vector<8x8xf32>
    %115 = tpu.matmul %114, %102, %cst_34 {dimension_numbers = #tpu.dot_dimension_numbers<[1], [0], [0], [1], [0, 0, 1, 1], [], []>} : vector<8x8xbf16>, vector<8x8xbf16>, vector<8x8xf32> -> vector<8x8xf32>
    %116 = tpu.concatenate %67, %83, %99, %115 in 1 : vector<8x8xf32>, vector<8x8xf32>, vector<8x8xf32>, vector<8x8xf32> -> vector<8x32xf32>
    %117 = arith.truncf %116 : vector<8x32xf32> to vector<8x32xbf16>
    %c0_35 = arith.constant 0 : index
    %c0_36 = arith.constant 0 : index
    %118 = vector.load %arg9[%c0_35, %c0_36] : memref<32x32xbf16, #tpu.memory_space<vmem>>, vector<32x32xbf16>
    %cst_37 = arith.constant dense<0.000000e+00> : vector<8x32xf32>
    %119 = tpu.matmul %117, %118, %cst_37 {dimension_numbers = #tpu.dot_dimension_numbers<[1], [0], [0], [1], [0, 0, 1, 1], [], []>} : vector<8x32xbf16>, vector<32x32xbf16>, vector<8x32xf32> -> vector<8x32xf32>
    %c0_38 = arith.constant 0 : index
    %c0_39 = arith.constant 0 : index
    %120 = vector.load %arg10[%c0_38, %c0_39] : memref<1x32xf32, #tpu.memory_space<vmem>>, vector<1x32xf32>
    %121 = vector.shape_cast %120 : vector<1x32xf32> to vector<32xf32>
    %122 = vector.shape_cast %121 : vector<32xf32> to vector<1x32xf32>
    %123 = vector.broadcast %122 : vector<1x32xf32> to vector<8x32xf32>
    %124 = arith.addf %119, %123 : vector<8x32xf32>
    %125 = arith.addf %11, %124 : vector<8x32xf32>
    %cst_40 = arith.constant dense<0.000000e+00> : vector<8xf32>
    %126 = vector.multi_reduction <add>, %125, %cst_40 [1] : vector<8x32xf32> to vector<8xf32>
    %127 = vector.shape_cast %126 : vector<8xf32> to vector<8x1xf32>
    %128 = arith.mulf %125, %125 : vector<8x32xf32>
    %cst_41 = arith.constant dense<0.000000e+00> : vector<8xf32>
    %129 = vector.multi_reduction <add>, %128, %cst_41 [1] : vector<8x32xf32> to vector<8xf32>
    %130 = vector.shape_cast %129 : vector<8xf32> to vector<8x1xf32>
    %cst_42 = arith.constant 3.125000e-02 : f32
    %131 = vector.broadcast %cst_42 : f32 to vector<8x1xf32>
    %132 = arith.mulf %127, %131 : vector<8x1xf32>
    %cst_43 = arith.constant 3.200000e+01 : f32
    %133 = vector.broadcast %cst_43 : f32 to vector<8x1xf32>
    %134 = arith.mulf %133, %132 : vector<8x1xf32>
    %135 = arith.mulf %134, %132 : vector<8x1xf32>
    %136 = arith.subf %130, %135 : vector<8x1xf32>
    %cst_44 = arith.constant 0.0322580636 : f32
    %137 = vector.broadcast %cst_44 : f32 to vector<8x1xf32>
    %138 = arith.mulf %136, %137 : vector<8x1xf32>
    %cst_45 = arith.constant 0.000000e+00 : f32
    %139 = vector.broadcast %cst_45 : f32 to vector<8x1xf32>
    %140 = arith.maximumf %138, %139 : vector<8x1xf32>
    %141 = math.sqrt %140 : vector<8x1xf32>
    %cst_46 = arith.constant 9.99999997E-7 : f32
    %142 = vector.broadcast %cst_46 : f32 to vector<8x1xf32>
    %143 = arith.addf %141, %142 : vector<8x1xf32>
    %144 = tpu.reciprocal %143 {approx = true} : vector<8x1xf32> -> vector<8x1xf32>
    %145 = vector.broadcast %132 : vector<8x1xf32> to vector<8x32xf32>
    %146 = arith.subf %125, %145 : vector<8x32xf32>
    %147 = vector.broadcast %2 : f32 to vector<8x32xf32>
    %148 = arith.mulf %147, %146 : vector<8x32xf32>
    %149 = vector.broadcast %144 : vector<8x1xf32> to vector<8x32xf32>
    %150 = arith.mulf %148, %149 : vector<8x32xf32>
    %151 = vector.broadcast %3 : f32 to vector<8x32xf32>
    %152 = arith.addf %150, %151 : vector<8x32xf32>
    %153 = arith.truncf %152 : vector<8x32xf32> to vector<8x32xbf16>
    %c0_47 = arith.constant 0 : index
    %c0_48 = arith.constant 0 : index
    %154 = vector.load %arg11[%c0_47, %c0_48] : memref<32x64xbf16, #tpu.memory_space<vmem>>, vector<32x64xbf16>
    %cst_49 = arith.constant dense<0.000000e+00> : vector<8x64xf32>
    %155 = tpu.matmul %153, %154, %cst_49 {dimension_numbers = #tpu.dot_dimension_numbers<[1], [0], [0], [1], [0, 0, 1, 1], [], []>} : vector<8x32xbf16>, vector<32x64xbf16>, vector<8x64xf32> -> vector<8x64xf32>
    %c0_50 = arith.constant 0 : index
    %c0_51 = arith.constant 0 : index
    %156 = vector.load %arg12[%c0_50, %c0_51] : memref<1x64xf32, #tpu.memory_space<vmem>>, vector<1x64xf32>
    %157 = vector.shape_cast %156 : vector<1x64xf32> to vector<64xf32>
    %158 = vector.shape_cast %157 : vector<64xf32> to vector<1x64xf32>
    %159 = vector.broadcast %158 : vector<1x64xf32> to vector<8x64xf32>
    %160 = arith.addf %155, %159 : vector<8x64xf32>
    %cst_52 = arith.constant 0.000000e+00 : f32
    %161 = vector.broadcast %cst_52 : f32 to vector<8x64xf32>
    %162 = arith.maximumf %160, %161 : vector<8x64xf32>
    %163 = arith.truncf %162 : vector<8x64xf32> to vector<8x64xbf16>
    %c0_53 = arith.constant 0 : index
    %c0_54 = arith.constant 0 : index
    %164 = vector.load %arg13[%c0_53, %c0_54] : memref<64x32xbf16, #tpu.memory_space<vmem>>, vector<64x32xbf16>
    %cst_55 = arith.constant dense<0.000000e+00> : vector<8x32xf32>
    %165 = tpu.matmul %163, %164, %cst_55 {dimension_numbers = #tpu.dot_dimension_numbers<[1], [0], [0], [1], [0, 0, 1, 1], [], []>} : vector<8x64xbf16>, vector<64x32xbf16>, vector<8x32xf32> -> vector<8x32xf32>
    %c0_56 = arith.constant 0 : index
    %c0_57 = arith.constant 0 : index
    %166 = vector.load %arg14[%c0_56, %c0_57] : memref<1x32xf32, #tpu.memory_space<vmem>>, vector<1x32xf32>
    %167 = vector.shape_cast %166 : vector<1x32xf32> to vector<32xf32>
    %168 = vector.shape_cast %167 : vector<32xf32> to vector<1x32xf32>
    %169 = vector.broadcast %168 : vector<1x32xf32> to vector<8x32xf32>
    %170 = arith.addf %165, %169 : vector<8x32xf32>
    %171 = arith.addf %125, %170 : vector<8x32xf32>
    %c0_58 = arith.constant 0 : index
    %c0_59 = arith.constant 0 : index
    %c0_60 = arith.constant 0 : index
    %172 = vector.load %arg16[%c0_58, %c0_59, %c0_60] : memref<1x8x32xf32, #tpu.memory_space<vmem>>, vector<1x8x32xf32>
    %173 = vector.shape_cast %172 : vector<1x8x32xf32> to vector<8x32xf32>
    %174 = vector.shape_cast %171 : vector<8x32xf32> to vector<1x8x32xf32>
    tpu.vector_store %arg16[%c0_58, %c0_59, %c0_60], %174 {strides = array<i32>} : memref<1x8x32xf32, #tpu.memory_space<vmem>>, vector<1x8x32xf32>,
    return
  }
  func.func @transform_0(%arg0: i32, %arg1: i32) -> i32 {
    %c0_i32 = arith.constant 0 : i32
    %c0_i32_0 = arith.constant 0 : i32
    return %c0_i32 : i32
  }
  func.func @transform_1(%arg0: i32, %arg1: i32) -> (i32, i32) {
    %c0_i32 = arith.constant 0 : i32
    %c0_i32_0 = arith.constant 0 : i32
    %c0_i32_1 = arith.constant 0 : i32
    return %c0_i32, %c0_i32_0 : i32, i32
  }
  func.func @transform_2(%arg0: i32, %arg1: i32) -> (i32, i32) {
    %c0_i32 = arith.constant 0 : i32
    %c0_i32_0 = arith.constant 0 : i32
    %c0_i32_1 = arith.constant 0 : i32
    return %c0_i32, %c0_i32_0 : i32, i32
  }
  func.func @transform_3(%arg0: i32, %arg1: i32) -> (i32, i32) {
    %c0_i32 = arith.constant 0 : i32
    %c0_i32_0 = arith.constant 0 : i32
    %c0_i32_1 = arith.constant 0 : i32
    return %c0_i32, %c0_i32_0 : i32, i32
  }
  func.func @transform_4(%arg0: i32, %arg1: i32) -> (i32, i32) {
    %c0_i32 = arith.constant 0 : i32
    %c0_i32_0 = arith.constant 0 : i32
    %c0_i32_1 = arith.constant 0 : i32
    return %c0_i32, %c0_i32_0 : i32, i32
  }
  func.func @transform_5(%arg0: i32, %arg1: i32) -> (i32, i32) {
    %c0_i32 = arith.constant 0 : i32
    %c0_i32_0 = arith.constant 0 : i32
    %c0_i32_1 = arith.constant 0 : i32
    return %c0_i32, %c0_i32_0 : i32, i32
  }
  func.func @transform_6(%arg0: i32, %arg1: i32) -> (i32, i32) {
    %c0_i32 = arith.constant 0 : i32
    %c0_i32_0 = arith.constant 0 : i32
    %c0_i32_1 = arith.constant 0 : i32
    return %c0_i32, %c0_i32_0 : i32, i32
  }
  func.func @transform_7(%arg0: i32, %arg1: i32) -> (i32, i32) {
    %c0_i32 = arith.constant 0 : i32
    %c0_i32_0 = arith.constant 0 : i32
    %c0_i32_1 = arith.constant 0 : i32
    return %c0_i32, %c0_i32_0 : i32, i32
  }
  func.func @transform_8(%arg0: i32, %arg1: i32) -> (i32, i32) {
    %c0_i32 = arith.constant 0 : i32
    %c0_i32_0 = arith.constant 0 : i32
    %c0_i32_1 = arith.constant 0 : i32
    return %c0_i32, %c0_i32_0 : i32, i32
  }
  func.func @transform_9(%arg0: i32, %arg1: i32) -> (i32, i32) {
    %c0_i32 = arith.constant 0 : i32
    %c0_i32_0 = arith.constant 0 : i32
    %c0_i32_1 = arith.constant 0 : i32
    return %c0_i32, %c0_i32_0 : i32, i32
  }
  func.func @transform_10(%arg0: i32, %arg1: i32) -> (i32, i32) {
    %c0_i32 = arith.constant 0 : i32
    %c0_i32_0 = arith.constant 0 : i32
    %c0_i32_1 = arith.constant 0 : i32
    return %c0_i32, %c0_i32_0 : i32, i32
  }
  func.func @transform_11(%arg0: i32, %arg1: i32) -> (i32, i32) {
    %c0_i32 = arith.constant 0 : i32
    %c0_i32_0 = arith.constant 0 : i32
    %c0_i32_1 = arith.constant 0 : i32
    return %c0_i32, %c0_i32_0 : i32, i32
  }
  func.func @transform_12(%arg0: i32, %arg1: i32) -> (i32, i32) {
    %c0_i32 = arith.constant 0 : i32
    %c0_i32_0 = arith.constant 0 : i32
    %c0_i32_1 = arith.constant 0 : i32
    return %c0_i32, %c0_i32_0 : i32, i32
  }
  func.func @transform_13(%arg0: i32, %arg1: i32) -> (i32, i32, i32) {
    %c0_i32 = arith.constant 0 : i32
    %c0_i32_0 = arith.constant 0 : i32
    %c0_i32_1 = arith.constant 0 : i32
    return %arg0, %c0_i32, %c0_i32_0 : i32, i32, i32
  }
  func.func @transform_14(%arg0: i32, %arg1: i32) -> (i32, i32, i32) {
    %c0_i32 = arith.constant 0 : i32
    %c0_i32_0 = arith.constant 0 : i32
    return %arg0, %arg1, %c0_i32 : i32, i32, i32
  }
}

</mosaic_0001>

<bundles_post_ra>
// kernel: tpu_custom_call.1
= control target key start
LH: loop header
LB: loop body
LE: loop exit
PB: predicated region body
PF: predicated region fallthrough
CT: control target
= control target key end

     0   :  { %s2921_s0 = inlined_call_operand.hbm [shape: f32[4], index: 0, kind: input, shape index: {}]   ;;  %s2922_s1 = inlined_call_operand.vmem [shape: bf16[32,32], index: 1, kind: input, shape index: {}]   ;;  %s2923_s2 = inlined_call_operand.vmem [shape: f32[1,32], index: 2, kind: input, shape index: {}]   ;;  %s2924_s3 = inlined_call_operand.vmem [shape: bf16[32,32], index: 3, kind: input, shape index: {}]   ;;  %s2925_s4 = inlined_call_operand.hbm [shape: f32[1,32], index: 4, kind: input, shape index: {}]   ;;  %s2926_s5 = inlined_call_operand.vmem [shape: bf16[32,32], index: 5, kind: input, shape index: {}]   ;;  %s2927_s6 = inlined_call_operand.hbm [shape: f32[1,32], index: 6, kind: input, shape index: {}]   ;;  %s2928_s7 = inlined_call_operand.hbm [shape: bf16[32,32], index: 7, kind: input, shape index: {}]   ;;  %s2929_s8 = inlined_call_operand.hbm [shape: f32[1,32], index: 8, kind: input, shape index: {}]   ;;  %s2930_s9 = inlined_call_operand.vmem [shape: bf16[32,64], index: 9, kind: input, shape index: {}]   ;;  %s2931_s10 = inlined_call_operand.hbm [shape: f32[1,64], index: 10, kind: input, shape index: {}]   ;;  %s2932_s11 = inlined_call_operand.vmem [shape: bf16[64,32], index: 11, kind: input, shape index: {}]   ;;  %s2933_s12 = inlined_call_operand.hbm [shape: f32[1,32], index: 12, kind: input, shape index: {}]   ;;  %s2934_s13 = inlined_call_operand.vmem [shape: f32[2,8,32], index: 13, kind: input, shape index: {}]   ;;  %s2935_s14 = inlined_call_operand.hbm [shape: f32[2,8,32], index: 14, kind: output, shape index: {}]  }
   0x1   :  { %2950 = sst [smem:[#allocation32_spill]] %s2921_s0 }
   0x2   :  { %2951 = sst [smem:[#allocation33_spill]] %s2925_s4 }
   0x3   :  { %2952 = sst [smem:[#allocation34_spill]] %s2927_s6 }
   0x4   :  { %2953 = sst [smem:[#allocation35_spill]] %s2935_s14 }
   0x5   :  { %19 = vsyncpa [#allocation7], 0 }
   0x6   :  { %20 = vsyncpa [#allocation5], 0 }
   0x7   :  { %21 = vsyncpa [#allocation10], 0 }
   0x8   :  { %22 = vsyncpa [#allocation13], 0 }
   0x9   :  { %23 = vsyncpa [#allocation16], 0 }
   0xa   :  { %24 = vsyncpa [#allocation6], 0 }
   0xb   :  { %26 = vsyncpa [#allocation6 + $0x1], 0  ;;  %s2465_s29 = smov 0   ;;  %s2467_s30 = smov 0  }
   0xc   :  { %s2469_s15 = smov 0   ;;  %s2471_s16 = smov 0  }
   0xd   :  { %s2473_s17 = smov 0   ;;  %s2475_s18 = smov 0  }
   0xe LB: > { %2954 = sst [smem:[#allocation24_spill]] %s2350_s29  ;;  %s1711_s19 = sadd.s32 4294967295, %s2370_s18   ;;  %s2370_s18 = sphi %s2475_s18, %s32_s18   ;;  %s2366_s17 = sphi %s2473_s17, %s2984_s17   ;;  %s2362_s16 = sphi %s2471_s16, %s2983_s16   ;;  %s2358_s15 = sphi %s2469_s15, %s2982_s15   ;;  %s2354_s30 = sphi %s2467_s30, %s2986_s30   ;;  %s2350_s29 = sphi %s2465_s29, %s2985_s29  }
   0xf   : > { %2955 = sst [smem:[#allocation25_spill]] %s2358_s15  ;;  %s1712_s20 = sadd.s32 4294967294, %s2370_s18  }
  0x10   : > { %2956 = sst [smem:[#allocation26_spill]] %s2366_s17  ;;  %s44_s21 = sadd.s32 1, %s2366_s17 }
  0x11   : > { %2957 = sst [smem:[#allocation27_spill]] %s2370_s18  ;;  %s352_s22 = sadd.s32 1, %s2358_s15 }
  0x12   : > { %p46_p0 = scmp.ge.s32.totalorder %s44_s21, 2  ;;  %p362_p1 = scmp.ne.s32.totalorder %s2358_s15, %s2354_s30 }
  0x13   : > { %p363_p2 = scmp.eq.s32.totalorder %s1711_s19, 1  ;;  %p368_p3 = scmp.ne.s32.totalorder %s2354_s30, %s2350_s29 }
  0x14   : > { %s2988_s21 = smov (%p46_p0, %s44_s21), 0  ;;  %p369_p5 = scmp.eq.s32.totalorder %s1712_s20, 1 }
  0x15   : > { %2958 = sst [smem:[#allocation28_spill]] %s2988_s21  ;;  %p2505_p4 = por %p363_p2, %p362_p1 }
  0x16   : > { %s347_s24 = ssub.s32 %s2366_s17, %s2988_s21  ;;  %p1713_p6 = scmp.ge.s32.totalorder %s2370_s18, 1 }
  0x17   : > { %s2959_s23 = scalar_select %p2505_p4, 1, 0 }
  0x18   : > { %p350_p7 = scmp.eq.s32.totalorder %s347_s24, 0  ;;  %p2512_p8 = por %p369_p5, %p368_p3 }
  0x19   : > { %2960 = sst [smem:[#allocation29_spill]] %s2959_s23  ;;  %p376_p9 = scmp.lt.s32.totalorder %s2370_s18, 3 }
  0x1a   : > { %s2961_s25 = scalar_select %p2512_p8, 1, 0 }
  0x1b   : > { %s2518_s26 = scalar_select %p350_p7, %s2358_s15, %s352_s22  }
  0x1c   : > { %2962 = sst [smem:[#allocation30_spill]] %s2961_s25  ;;  %p2520_p10 = pnand %p1713_p6, %p376_p9 }
  0x1d   : > { %2963 = sst [smem:[#allocation31_spill]] %s2518_s26  ;;  %p2524_p11 = scmp.eq.s32.totalorder %s1711_s19, 0 }
  0x1e   : > { %s2964_s27 = scalar_select %p2520_p10, 1, 0 }
  0x1f   : > { %s2965_s28 = scalar_select %p2524_p11, 1, 0 }
  0x20   : > { %p1941_p12 = pneg %p2520_p10  ;;  %s2372_s20 = smov [#allocation9]  }
  0x21   : > { %s421_s24 = sshll.u32 %s2372_s20, 4  ;;  %s2373_s21 = smov [#allocation12]   ;;  %s422_s24 = int_to_ptr.vmem [resolvable:$true] %s421_s24 }
  0x22   : > { %s445_s17 = sshll.u32 %s2373_s21, 4  ;;  %p2532_p13 = pnand %p2524_p11, %p1941_p12  ;;  %s2536_s17 = int_to_ptr.vmem [resolvable:$true] %s445_s17 }
  0x23   : > { %s2967_s6 = sld [smem:[#allocation34_spill]] }
  0x24   : > { %p2546_p1 = pneg %p2532_p13 }
  0x29   : > { %s2091_s15 = scalar_lea.hbm %s2967_s6, 16 }
  0x2a   : > { %p2092_p0 = scmp.ne.s32.totalorder %s2967_s6, %s2091_s15  ;;  %p2098_p5 = scmp.lt.u32.totalorder %s2091_s15, %s2967_s6 }
  0x2c   : > { %p2094_p2 = pnand %p2546_p1, %p2092_p0 }
  0x2e   : > { %p2095_p3 = pneg %p2094_p2 }
  0x30   : > { %p2100_p6 = pnand %p2098_p5, %p2095_p3 }
  0x32   : > { %2103 = shalt.err (!%p2100_p6)
}
  0x33   : > { %s2104_s26 = scalar_lea.vmem %s422_s24, 16  ;;  %s2111_s29 = scalar_lea.vmem %s422_s24, 32 }
  0x34   : > { %p2105_p7 = scmp.ne.s32.totalorder %s422_s24, %s2104_s26  ;;  %p2112_p8 = scmp.lt.s32.totalorder %s422_s24, %s422_s24 }
  0x35   : > { %p2113_p4 = scmp.lt.s32.totalorder %s2111_s29, %s2104_s26 }
  0x36   : > { %p2107_p9 = pnand %p2105_p7, %p2546_p1 }
  0x37   : > { %p2114_p11 = por %p2113_p4, %p2112_p8 }
  0x38   : > { %p2108_p12 = pneg %p2107_p9 }
  0x3a   : > { %p2115_p10 = pnand %p2114_p11, %p2108_p12 }
  0x3c   : > { %2118 = shalt.err (!%p2115_p10)
}
  0x3d   : > { %1950 = dma.hbm_to_vmem [thread:$0]  (!%p2532_p13), %s2967_s6, 16, %s422_s24, [#allocation10]  }
  0x3e   : > { %s2119_s21 = scalar_lea.hbm %s2929_s8, 16 }
  0x3f   : > { %p2120_p0 = scmp.ne.s32.totalorder %s2929_s8, %s2119_s21  ;;  %p2126_p8 = scmp.lt.u32.totalorder %s2119_s21, %s2929_s8 }
  0x41   : > { %p2122_p2 = pnand %p2120_p0, %p2546_p1 }
  0x43   : > { %p2123_p4 = pneg %p2122_p2 }
  0x45   : > { %p2128_p10 = pnand %p2126_p8, %p2123_p4 }
  0x47   : > { %2131 = shalt.err (!%p2128_p10)
}
  0x48   : > { %s2132_s24 = scalar_lea.vmem %s2536_s17, 16  ;;  %s2139_s14 = scalar_lea.vmem %s2536_s17, 32 }
  0x49   : > { %p2133_p11 = scmp.ne.s32.totalorder %s2536_s17, %s2132_s24  ;;  %p2140_p6 = scmp.lt.s32.totalorder %s2536_s17, %s2536_s17 }
  0x4a   : > { %p2141_p7 = scmp.lt.s32.totalorder %s2139_s14, %s2132_s24 }
  0x4b   : > { %p2135_p3 = pnand %p2133_p11, %p2546_p1 }
  0x4c   : > { %p2142_p9 = por %p2141_p7, %p2140_p6 }
  0x4d   : > { %p2136_p5 = pneg %p2135_p3 }
  0x4f   : > { %p2143_p12 = pnand %p2142_p9, %p2136_p5 }
  0x51   : > { %2146 = shalt.err (!%p2143_p12)
}
  0x52   : > { %1956 = dma.hbm_to_vmem [thread:$0]  (!%p2532_p13), %s2929_s8, 16, %s2536_s17, [#allocation13]  }
  0x53   : > { %s2969_s0 = sld [smem:[#allocation32_spill]] }
  0x59   : > { %s2147_s18 = scalar_lea.hbm %s2969_s0, 16 }
  0x5a   : > { %p2148_p0 = scmp.ne.s32.totalorder %s2969_s0, %s2147_s18  ;;  %p2154_p8 = scmp.lt.u32.totalorder %s2147_s18, %s2969_s0 }
  0x5c   : > { %p2150_p2 = pnand %p2148_p0, %p2546_p1 }
  0x5e   : > { %p2151_p4 = pneg %p2150_p2 }
  0x60   : > { %p2156_p10 = pnand %p2154_p8, %p2151_p4 }
  0x62   : > { %2159 = shalt.err (!%p2156_p10)
}
  0x63   : > { %s2374_s14 = smov [#allocation4]   ;;  %s2375_s25 = smov [#allocation8]  }
  0x64   : > { %1944 = dma.hbm_to_smem (!%p2532_p13), %s2969_s0, 16, %s2374_s14, [#allocation7]  }
  0x65   : > { %s407_s19 = sshll.u32 %s2375_s25, 4  ;;  %s2376_s15 = smov [#allocation11]   ;;  %s408_s19 = int_to_ptr.vmem [resolvable:$true] %s407_s19 }
  0x66   : > { %s431_s21 = sshll.u32 %s2376_s15, 4  ;;  %s2970_s4 = sld [smem:[#allocation33_spill]]  ;;  %s2602_s21 = int_to_ptr.vmem [resolvable:$true] %s431_s21 }
  0x6c   : > { %s2160_s18 = scalar_lea.hbm %s2970_s4, 16 }
  0x6d   : > { %p2161_p11 = scmp.ne.s32.totalorder %s2970_s4, %s2160_s18  ;;  %p2167_p6 = scmp.lt.u32.totalorder %s2160_s18, %s2970_s4 }
  0x6f   : > { %p2163_p3 = pnand %p2161_p11, %p2546_p1 }
  0x71   : > { %p2164_p5 = pneg %p2163_p3 }
  0x73   : > { %p2169_p7 = pnand %p2167_p6, %p2164_p5 }
  0x75   : > { %2172 = shalt.err (!%p2169_p7)
}
  0x76   : > { %s2173_s23 = scalar_lea.vmem %s408_s19, 16  ;;  %s2180_s25 = scalar_lea.vmem %s408_s19, 32 }
  0x77   : > { %p2174_p9 = scmp.ne.s32.totalorder %s408_s19, %s2173_s23  ;;  %p2181_p2 = scmp.lt.s32.totalorder %s408_s19, %s408_s19 }
  0x78   : > { %p2182_p4 = scmp.lt.s32.totalorder %s2180_s25, %s2173_s23 }
  0x79   : > { %p2176_p12 = pnand %p2174_p9, %p2546_p1 }
  0x7a   : > { %p2183_p8 = por %p2182_p4, %p2181_p2 }
  0x7b   : > { %p2177_p0 = pneg %p2176_p12 }
  0x7d   : > { %p2184_p10 = pnand %p2183_p8, %p2177_p0 }
  0x7f   : > { %2187 = shalt.err (!%p2184_p10)
}
  0x80   : > { %1947 = dma.hbm_to_vmem [thread:$0]  (!%p2532_p13), %s2970_s4, 16, %s408_s19, [#allocation5]  }
  0x81   : > { %s2188_s18 = scalar_lea.hbm %s2928_s7, 256 }
  0x82   : > { %p2189_p11 = scmp.ne.s32.totalorder %s2928_s7, %s2188_s18  ;;  %p2195_p6 = scmp.lt.u32.totalorder %s2188_s18, %s2928_s7 }
  0x84   : > { %p2191_p3 = pnand %p2189_p11, %p2546_p1 }
  0x86   : > { %p2192_p5 = pneg %p2191_p3 }
  0x88   : > { %p2197_p7 = pnand %p2195_p6, %p2192_p5 }
  0x8a   : > { %2200 = shalt.err (!%p2197_p7)
}
  0x8b   : > { %s2201_s19 = scalar_lea.vmem %s2602_s21, 256  ;;  %p2209_p2 = scmp.lt.s32.totalorder %s2602_s21, %s2602_s21 }
  0x8c   : > { %p2202_p9 = scmp.ne.s32.totalorder %s2602_s21, %s2201_s19  ;;  %p2210_p4 = scmp.lt.s32.totalorder %s2201_s19, %s2201_s19 }
  0x8e   : > { %p2204_p12 = pnand %p2202_p9, %p2546_p1  ;;  %p2211_p8 = por %p2210_p4, %p2209_p2 }
  0x90   : > { %p2205_p0 = pneg %p2204_p12 }
  0x92   : > { %p2212_p10 = pnand %p2211_p8, %p2205_p0 }
  0x94   : > { %2215 = shalt.err (!%p2212_p10)
}
  0x95   : > { %s2377_s25 = smov 64   ;;  %s2378_s6 = smov 4  }
  0x96   : > { %1953 = dma.hbm_to_vmem [thread:$0]  (!%p2532_p13), %s2928_s7, 256, %s2602_s21, [#allocation10], %s2377_s25, %s2377_s25, %s2378_s6  }
  0x97   : > { %s2379_s29 = smov [#allocation14]   ;;  %s2380_s24 = smov [#allocation15]  }
  0x98   : > { %s459_s18 = sshll.u32 %s2379_s29, 4  ;;  %s473_s17 = sshll.u32 %s2380_s24, 4  ;;  %s460_s18 = int_to_ptr.vmem [resolvable:$true] %s459_s18  ;;  %s2645_s17 = int_to_ptr.vmem [resolvable:$true] %s473_s17 }
  0x99   : > { %s2216_s19 = scalar_lea.hbm %s2931_s10, 16 }
  0x9a   : > { %p2217_p11 = scmp.ne.s32.totalorder %s2931_s10, %s2216_s19  ;;  %p2223_p6 = scmp.lt.u32.totalorder %s2216_s19, %s2931_s10 }
  0x9c   : > { %p2219_p3 = pnand %p2217_p11, %p2546_p1 }
  0x9e   : > { %p2220_p5 = pneg %p2219_p3 }
  0xa0   : > { %p2225_p7 = pnand %p2223_p6, %p2220_p5 }
  0xa2   : > { %2228 = shalt.err (!%p2225_p7)
}
  0xa3   : > { %s2229_s25 = scalar_lea.vmem %s460_s18, 16  ;;  %s2236_s6 = scalar_lea.vmem %s460_s18, 32 }
  0xa4   : > { %p2230_p9 = scmp.ne.s32.totalorder %s460_s18, %s2229_s25  ;;  %p2237_p2 = scmp.lt.s32.totalorder %s460_s18, %s460_s18 }
  0xa5   : > { %p2238_p4 = scmp.lt.s32.totalorder %s2236_s6, %s2229_s25 }
  0xa6   : > { %p2232_p12 = pnand %p2230_p9, %p2546_p1 }
  0xa7   : > { %p2239_p8 = por %p2238_p4, %p2237_p2 }
  0xa8   : > { %p2233_p0 = pneg %p2232_p12 }
  0xaa   : > { %p2240_p10 = pnand %p2239_p8, %p2233_p0 }
  0xac   : > { %2243 = shalt.err (!%p2240_p10)
}
  0xad   : > { %1959 = dma.hbm_to_vmem [thread:$0]  (!%p2532_p13), %s2931_s10, 16, %s460_s18, [#allocation13]  }
  0xae   : > { %s2244_s24 = scalar_lea.hbm %s2933_s12, 16 }
  0xaf   : > { %p2245_p11 = scmp.ne.s32.totalorder %s2933_s12, %s2244_s24  ;;  %p2251_p6 = scmp.lt.u32.totalorder %s2244_s24, %s2933_s12 }
  0xb1   : > { %p2247_p3 = pnand %p2245_p11, %p2546_p1 }
  0xb3   : > { %p2248_p5 = pneg %p2247_p3 }
  0xb5   : > { %p2253_p7 = pnand %p2251_p6, %p2248_p5 }
  0xb7   : > { %2256 = shalt.err (!%p2253_p7)
}
  0xb8   : > { %s2257_s18 = scalar_lea.vmem %s2645_s17, 16  ;;  %s2264_s21 = scalar_lea.vmem %s2645_s17, 32 }
  0xb9   : > { %p2258_p9 = scmp.ne.s32.totalorder %s2645_s17, %s2257_s18  ;;  %p2265_p2 = scmp.lt.s32.totalorder %s2645_s17, %s2645_s17 }
  0xba   : > { %p2266_p4 = scmp.lt.s32.totalorder %s2264_s21, %s2257_s18 }
  0xbb   : > { %p2260_p12 = pnand %p2258_p9, %p2546_p1 }
  0xbc   : > { %p2267_p8 = por %p2266_p4, %p2265_p2 }
  0xbd   : > { %p2261_p0 = pneg %p2260_p12 }
  0xbf   : > { %p2268_p10 = pnand %p2267_p8, %p2261_p0 }
  0xc1   : > { %2271 = shalt.err (!%p2268_p10)
}
  0xc2   : > { %1962 = dma.hbm_to_vmem [thread:$0]  (!%p2532_p13), %s2933_s12, 16, %s2645_s17, [#allocation16]  }
  0xc3   : > { %p2971_p11 = scmp.ne.s32.totalorder %s2964_s27, 0 }
  0xc4   : > { %p2972_p1 = scmp.ne.s32.totalorder (!%p2971_p11), %s2965_s28, 0 }
  0xc5   : > { %493 = sbr.rel (%p2971_p11) target bundleno = 2525 (0x9dd), region = 76 }
  0xcc   : > { %2325 = dma.done.wait (%p2972_p1), [#allocation7], 16  }
  0xcd   : > { %2327 = vsyncadd (%p2972_p1), [#allocation7], 4294967280 }
  0xce   : > { %2329 = dma.done.wait (%p2972_p1), [#allocation5], 16  }
  0xcf   : > { %2331 = vsyncadd (%p2972_p1), [#allocation5], 4294967280 }
  0xd0   : > { %2333 = dma.done.wait (%p2972_p1), [#allocation10], 272  }
  0xd1   : > { %2335 = vsyncadd (%p2972_p1), [#allocation10], 4294967024 }
  0xd2   : > { %2337 = dma.done.wait (%p2972_p1), [#allocation13], 32  }
  0xd3   : > { %2339 = vsyncadd (%p2972_p1), [#allocation13], 4294967264 }
  0xd4   : > { %2341 = dma.done.wait (%p2972_p1), [#allocation16], 16  }
  0xd5   : > { %2343 = vsyncadd (%p2972_p1), [#allocation16], 4294967280 }
  0xd6   : > { %523 = sfence }
  0xd7   : > { %p563_p13 = scmp.lt.s32.totalorder %s2362_s16, 1  ;;  %vm577_vm0 = vcmask 261120   ;;  %v2047_v4 = vld [vmem:[%s2924_s3] sm:$0xff]   ;;  %v2381_v6 = vmov 0.0   ;;  %v2049_v7 = vld [vmem:[%s2924_s3 + $0x8] sm:$0xff]   ;;  %vm2382_vm1 = vmmov 0  }
  0xd8   : > { %v2048_v5 = vld [vmem:[%s2926_s5] sm:$0xff]   ;;  %1811 = vmatprep.subr.bf16.mxu0 %v2381_v6  ;;  %1819 = vmatprep.subr.bf16.mxu1 %v2381_v6  ;;  %v2050_v8 = vld [vmem:[%s2926_s5 + $0x8] sm:$0xff]   ;;  %s568_s15 = sld [smem:[#allocation4]]  ;;  %s1732_s18 = sld [smem:[#allocation4 + $0x1]]  ;;  %vm737_vm6 = vcmask 257024   ;;  %vm844_vm7 = vcmask 64512  }
  0xd9   : > { %s564_s27 = scalar_select %p563_p13, %s2362_s16, 1  ;;  %1812 = vmatpush3.bf16.msra.mxu0 %v2047_v4  ;;  %1820 = vmatpush3.bf16.msra.mxu1 %v2048_v5  ;;  %v2051_v47 = vld [vmem:[%s2922_s1] sm:$0xff]   ;;  %v2052_v50 = vld [vmem:[%s2922_s1 + $0x8] sm:$0xff]   ;;  %vm906_vm8 = vcmask 1043456   ;;  %vm1300_vm9 = vcmask 130048   ;;  %vm1302_vm10 = vcmask 195584  }
  0xda   : > { %1813 = vmatprep.subr.bf16.mxu0 %v2381_v6  ;;  %1821 = vmatprep.subr.bf16.mxu1 %v2381_v6  ;;  %v1735_v53 = vld [vmem:[#allocation8] ss:$0 sm:$0xff]  ;;  %v1739_v54 = vld [vmem:[#allocation9] ss:$0 sm:$0xff]  ;;  %v1743_v4 = vld [vmem:[%s2923_s2] ss:$0 sm:$0xff] }
  0xdb   : > { %s1731_s22 = sshll.u32 %s564_s27, 3  ;;  %1815 = vmatprep.mubr.msk.bf16.mxu0 %vm2382_vm1, %v2381_v6  ;;  %1823 = vmatprep.mubr.msk.bf16.mxu1 %vm2382_vm1, %v2381_v6  ;;  %s2383_s17 = smov 120   ;;  %vm1508_vm13 = vcmask 523264  }
  0xdc   : > { %s566_s0 = scalar_lea.vmem %s2934_s13, %s1731_s22  ;;  %s2385_s28 = smov 112  }
  0xdd   : > { %v2716_v0 = vld [vmem:[%s566_s0] sm:$0xff]  ;;  %1814 = vmatpush3.bf16.msra.mxu0 %v2049_v7  ;;  %1822 = vmatpush3.bf16.msra.mxu1 %v2050_v8  ;;  %s2384_s0 = smov 104   ;;  %s2386_s4 = smov 8  }
  0xde   : > { %v745_v1 = vsel %vm577_vm0, %v2716_v0, 0.0  ;;  %v748_v2 = vmul.f32 %v2716_v0, %v2716_v0  ;;  %1827 = vmatprep.subr.bf16.mxu0 %v2381_v6  ;;  %1835 = vmatprep.subr.bf16.mxu1 %v2381_v6  ;;  %v601_v38 = vstv %s568_s15  ;;  %v604_v42 = vstv %s1732_s18  ;;  %s2387_s26 = smov 16   ;;  %s2388_s29 = smov 24  }
  0xdf   : > { %746 = vadd.xlane.f32.xlu1 %v745_v1  ;;  %579 = vadd.xlane.f32.xlu0 %v745_v1  ;;  %s1733_s6 = sld [smem:[#allocation4 + $0x2]]  ;;  %s1734_s27 = sld [smem:[#allocation4 + $0x3]] }
  0xe0   : > { %v749_v3 = vsel %vm577_vm0, %v748_v2, 0.0  ;;  %s2974_s15 = sld [smem:[#allocation35_spill]] }
  0xe3   : > { %750 = vadd.xlane.f32.xlu1 %v749_v3  ;;  %583 = vadd.xlane.f32.xlu0 %v749_v3 }
  0xe6   : > { %s2975_s21 = smov %s2974_s15 }
 0x16c   : > { %v747_v9 = vpop.xlane.xlu1 %746  ;;  %v580_v10 = vpop.xlane.xlu0 %579 }
 0x16d   : > { %v752_v11 = vmul.f32 0.03125, %v747_v9  ;;  %v585_v12 = vmul.f32 0.03125, %v580_v10 }
 0x16f   : > { %v753_v13 = vmul.f32 32.0, %v752_v11  ;;  %v586_v14 = vmul.f32 32.0, %v585_v12  ;;  %v600_v37 = vsub.f32 %v2716_v0, %v585_v12  ;;  %v767_v39 = vsub.f32 %v2716_v0, %v752_v11 }
 0x170   : > { %v751_v15 = vpop.xlane.xlu1 %750  ;;  %v584_v16 = vpop.xlane.xlu0 %583 }
 0x171   : > { %v754_v17 = vmul.f32 %v753_v13, %v752_v11  ;;  %v587_v18 = vmul.f32 %v586_v14, %v585_v12  ;;  %v602_v40 = vmul.f32 %v601_v38, %v600_v37  ;;  %v769_v45 = vmul.f32 %v767_v39, %v601_v38 }
 0x173   : > { %v755_v19 = vsub.f32 %v751_v15, %v754_v17  ;;  %v588_v20 = vsub.f32 %v584_v16, %v587_v18 }
 0x175   : > { %v756_v21 = vmul.f32 0.032258064, %v755_v19  ;;  %v589_v22 = vmul.f32 0.032258064, %v588_v20 }
 0x177   : > { %v757_v23 = vmax.f32 %v756_v21, 0.0  ;;  %v590_v24 = vmax.f32 %v589_v22, 0.0 }
 0x179   : > { %2063 = vrsqrt.f32 %v757_v23  ;;  %vm760_vm2 = vcmp.eq.f32.partialorder %v757_v23, inf  ;;  %v763_v26 = vand.u32 2147483648, %v757_v23  ;;  %vm762_vm3 = vcmp.eq.f32.partialorder %v757_v23, 0.0 }
 0x17a   : > { %2065 = vrsqrt.f32 %v590_v24  ;;  %vm593_vm4 = vcmp.eq.f32.partialorder %v590_v24, inf  ;;  %v596_v31 = vand.u32 2147483648, %v590_v24  ;;  %vm595_vm5 = vcmp.eq.f32.partialorder %v590_v24, 0.0 }
 0x183   : > { %v2064_v25 = vpop.eup %2063 }
 0x184   : > { %v2066_v27 = vpop.eup %2065  ;;  %v759_v28 = vmul.f32 %v2064_v25, %v757_v23 }
 0x185   : > { %v592_v29 = vmul.f32 %v2066_v27, %v590_v24 }
 0x186   : > { %v761_v30 = vsel %vm760_vm2, %v757_v23, %v759_v28 }
 0x187   : > { %v764_v32 = vsel %vm762_vm3, %v763_v26, %v761_v30  ;;  %v594_v33 = vsel %vm593_vm4, %v590_v24, %v592_v29 }
 0x188   : > { %v597_v34 = vsel %vm595_vm5, %v596_v31, %v594_v33  ;;  %v765_v35 = vadd.f32 1e-06, %v764_v32 }
 0x189   : > { %v598_v36 = vadd.f32 1e-06, %v597_v34 }
 0x18b   : > { %2067 = vrcp.f32 %v598_v36 }
 0x18c   : > { %2069 = vrcp.f32 %v765_v35 }
 0x195   : > { %v2068_v41 = vpop.eup %2067 }
 0x196   : > { %v603_v43 = vmul.f32 %v2068_v41, %v602_v40  ;;  %v2070_v44 = vpop.eup %2069 }
 0x197   : > { %v770_v49 = vmul.f32 %v2070_v44, %v769_v45 }
 0x198   : > { %v605_v46 = vadd.f32 %v604_v42, %v603_v43 }
 0x199   : > { %v772_v51 = vadd.f32 %v770_v49, %v604_v42 }
 0x19a   : > { %v606_v48 = vpack.c.bf16 %v605_v46, %v605_v46 }
 0x19b   : > { %v773_v52 = vpack.c.bf16 %v772_v51, %v772_v51 }
 0x19c   : > { %1816 = vmatmul.mubr.msk.bf16.vlgmr.msra.gmra.mrb[0].mxu0 %vm577_vm0, %v606_v48  ;;  %1824 = vmatmul.mubr.msk.bf16.vlgmr.msra.gmra.mrb[0].mxu1 %vm577_vm0, %v606_v48 }
 0x19d   : > { %1828 = vmatpush3.bf16.msra.mxu0 %v2051_v47  ;;  %1831 = vmatprep.mubr.msk.bf16.mxu0 %vm2382_vm1, %v2381_v6 }
 0x19e   : > { %1829 = vmatprep.subr.bf16.mxu0 %v2381_v6  ;;  %1837 = vmatprep.mubr.msk.bf16.mxu1 %vm2382_vm1, %v2381_v6 }
 0x1a1   : > { %1830 = vmatpush3.bf16.msra.mxu0 %v2052_v50 }
 0x1a2   : > { %1841 = vmatprep.subr.bf16.mxu0 %v2381_v6 }
 0x1a4   : > { %1832 = vmatmul.mubr.msk.bf16.vlgmr.msra.gmra.mrb[4].mxu0 %vm577_vm0, %v773_v52 }
 0x1a5   : > { %1843 = vmatprep.mubr.msk.bf16.mxu0 %vm2382_vm1, %v2381_v6 }
 0x26f   : > { %v667_v55 = vpop.f32.mrb[0].mxu0  ;;  %v730_v56 = vpop.f32.mrb[0].mxu1 }
 0x270   : > { %v668_v57 = vadd.f32 %v1735_v53, %v667_v55  ;;  %v731_v58 = vadd.f32 %v1739_v54, %v730_v56  ;;  %v1817_v59 = vpop.f32.mrb[1].mxu0  ;;  %v1825_v60 = vpop.f32.mrb[1].mxu1 }
 0x271   : > { %v670_v61 = vpop.f32.mrb[2].mxu0  ;;  %v733_v62 = vpop.f32.mrb[2].mxu1 }
 0x272   : > { %v736_v63 = vpack.c.bf16 %v668_v57, %v668_v57  ;;  %v739_v1 = vpack.c.bf16 %v731_v58, %v731_v58  ;;  %v1818_v2 = vpop.f32.mrb[3].mxu0  ;;  %v1826_v3 = vpop.f32.mrb[3].mxu1 }
 0x274   : > { %738 = vst.msk [vmem:[#allocation2] sm:$0xf] %vm737_vm6, %v736_v63  ;;  %740 = vst.msk [vmem:[#allocation3] sm:$0xf] %vm737_vm6, %v739_v1 }
 0x277   : > { %v834_v5 = vpop.f32.mrb[4].mxu0 }
 0x278   : > { %v835_v7 = vadd.f32 %v1743_v4, %v834_v5  ;;  %v1833_v8 = vpop.f32.mrb[5].mxu0 }
 0x279   : > { %v837_v9 = vpop.f32.mrb[6].mxu0 }
 0x27a   : > { %v840_v10 = vmul.f32 0.35355338, %v835_v7  ;;  %v1834_v11 = vpop.f32.mrb[7].mxu0 }
 0x27b   : > { %v842_v12 = vld [vmem:[#allocation2] sm:$0xf]  ;;  %v2767_v13 = vld [vmem:[#allocation3] sm:$0xf] }
 0x27c   : > { %v841_v14 = vpack.c.bf16 %v840_v10, %v840_v10  ;;  %v849_v15 = vsel %vm844_vm7, %v842_v12, 0  ;;  %v908_v16 = vsel %vm906_vm8, %v2767_v13, 0  ;;  %v1749_v17 = vcombine.low %v842_v12, %v842_v12 }
 0x27d   : > { %1836 = vmatpush3.bf16.xpose.msra.mxu1 %v849_v15  ;;  %1842 = vmatpush3.bf16.msra.mxu0 %v908_v16  ;;  %v1751_v62 = vcombine.low %v2767_v13, %v2767_v13 }
 0x27e   : > { %956 = vrot.lane.b32.xlu0 %v1749_v17, %s2383_s17  ;;  %951 = vrot.lane.b32.xlu1 %v841_v14, %s2383_s17 }
 0x27f   : > { %1847 = vmatprep.subr.bf16.mxu1 %v2381_v6  ;;  %1853 = vmatprep.subr.bf16.mxu0 %v2381_v6 }
 0x282   : > { %1179 = vrot.lane.b32.xlu0 %v1749_v17, %s2384_s0  ;;  %1069 = vrot.lane.b32.xlu1 %v1749_v17, %s2385_s28 }
 0x284   : > { %1838 = vmatmul.mubr.msk.bf16.vlgmr.msra.gmra.mrb[4].mxu1 %vm844_vm7, %v841_v14 }
 0x285   : > { %1849 = vmatprep.mubr.msk.bf16.mxu1 %vm2382_vm1, %v2381_v6 }
 0x286   : > { %1067 = vrot.lane.b32.xlu1 %v841_v14, %s2385_s28 }
 0x28a   : > { %1177 = vrot.lane.b32.xlu1 %v841_v14, %s2384_s0 }
 0x2f0   : > { %v957_v18 = vpop.permute.xlu0 %956  ;;  %v952_v19 = vpop.permute.xlu1 %951 }
 0x2f1   : > { %v962_v20 = vsel %vm844_vm7, %v957_v18, 0 }
 0x2f2   : > { %1848 = vmatpush3.bf16.xpose.msra.mxu1 %v962_v20 }
 0x2f3   : > { %1859 = vmatprep.subr.bf16.mxu1 %v2381_v6 }
 0x2f4   : > { %v1070_v21 = vpop.permute.xlu1 %1069  ;;  %v1180_v23 = vpop.permute.xlu0 %1179 }
 0x2f5   : > { %v1075_v22 = vsel %vm844_vm7, %v1070_v21, 0  ;;  %v1185_v25 = vsel %vm844_vm7, %v1180_v23, 0 }
 0x2f8   : > { %v1068_v24 = vpop.permute.xlu1 %1067 }
 0x2f9   : > { %1850 = vmatmul.mubr.msk.bf16.vlgmr.msra.gmra.mrb[8].mxu1 %vm844_vm7, %v952_v19 }
 0x2fa   : > { %1860 = vmatpush3.bf16.xpose.msra.mxu1 %v1075_v22  ;;  %1861 = vmatprep.mubr.msk.bf16.mxu1 %vm2382_vm1, %v2381_v6 }
 0x2fb   : > { %1871 = vmatprep.subr.bf16.mxu1 %v2381_v6 }
 0x2fc   : > { %v1178_v26 = vpop.permute.xlu1 %1177 }
 0x301   : > { %1862 = vmatmul.mubr.msk.bf16.vlgmr.msra.gmra.mrb[12].mxu1 %vm844_vm7, %v1068_v24 }
 0x302   : > { %1872 = vmatpush3.bf16.xpose.msra.mxu1 %v1185_v25  ;;  %1873 = vmatprep.mubr.msk.bf16.mxu1 %vm2382_vm1, %v2381_v6 }
 0x303   : > { %1883 = vmatprep.subr.bf16.mxu1 %v2381_v6 }
 0x309   : > { %1874 = vmatmul.mubr.msk.bf16.vlgmr.msra.gmra.mrb[16].mxu1 %vm844_vm7, %v1178_v26 }
 0x30a   : > { %1887 = vmatprep.mubr.msk.bf16.mxu1 %vm2382_vm1, %v2381_v6 }
 0x357   : > { %v885_v27 = vpop.f32.mrb[4].mxu1 }
 0x358   : > { %v1839_v28 = vpop.f32.mrb[5].mxu1  ;;  %v891_v29 = vsel %vm844_vm7, %v885_v27, -inf }
 0x359   : > { %892 = vmax.xlane.f32.xlu0 %v891_v29  ;;  %v888_v30 = vpop.f32.mrb[6].mxu1 }
 0x35a   : > { %v1840_v31 = vpop.f32.mrb[7].mxu1 }
 0x3cc   : > { %v998_v32 = vpop.f32.mrb[8].mxu1 }
 0x3cd   : > { %v1851_v33 = vpop.f32.mrb[9].mxu1  ;;  %v1004_v34 = vsel %vm844_vm7, %v998_v32, -inf }
 0x3ce   : > { %1005 = vmax.xlane.f32.xlu1 %v1004_v34  ;;  %v1001_v35 = vpop.f32.mrb[10].mxu1 }
 0x3cf   : > { %v1852_v36 = vpop.f32.mrb[11].mxu1 }
 0x3d4   : > { %v1111_v37 = vpop.f32.mrb[12].mxu1 }
 0x3d5   : > { %v1863_v38 = vpop.f32.mrb[13].mxu1  ;;  %v1117_v39 = vsel %vm844_vm7, %v1111_v37, -inf }
 0x3d6   : > { %1118 = vmax.xlane.f32.xlu0 %v1117_v39  ;;  %v1114_v40 = vpop.f32.mrb[14].mxu1 }
 0x3d7   : > { %v1864_v41 = vpop.f32.mrb[15].mxu1 }
 0x3d8   : > { %v2056_v41 = vld [vmem:[#allocation11 + $0x8] sm:$0xff]  }
 0x3dc   : > { %v1221_v42 = vpop.f32.mrb[16].mxu1 }
 0x3dd   : > { %v1875_v43 = vpop.f32.mrb[17].mxu1  ;;  %v1227_v44 = vsel %vm844_vm7, %v1221_v42, -inf }
 0x3de   : > { %1228 = vmax.xlane.f32.xlu0 %v1227_v44  ;;  %v1224_v45 = vpop.f32.mrb[18].mxu1 }
 0x3df   : > { %v1876_v46 = vpop.f32.mrb[19].mxu1 }
 0x3e6   : > { %v893_v47 = vpop.xlane.xlu0 %892 }
 0x3e7   : > { %v894_v48 = vsub.f32 %v885_v27, %v893_v47 }
 0x3e9   : > { %v895_v49 = vmul.f32 1.442695, %v894_v48 }
 0x3eb   : > { %2071 = vpow2.f32 %v895_v49 }
 0x3f5   : > { %v2072_v50 = vpop.eup %2071 }
 0x3f6   : > { %v897_v51 = vsel %vm844_vm7, %v2072_v50, 0.0 }
 0x3f7   : > { %898 = vadd.xlane.f32.xlu0 %v897_v51 }
 0x45b   : > { %v1006_v52 = vpop.xlane.xlu1 %1005 }
 0x45c   : > { %v1007_v53 = vsub.f32 %v998_v32, %v1006_v52  ;;  %v2055_v32 = vld [vmem:[#allocation11] sm:$0xff]  }
 0x45d   : > { %1884 = vmatpush3.bf16.msra.mxu1 %v2055_v32 }
 0x45e   : > { %v1008_v54 = vmul.f32 1.442695, %v1007_v53  ;;  %1885 = vmatprep.subr.bf16.mxu1 %v2381_v6  ;;  %v1757_v53 = vld [vmem:[#allocation12] ss:$0 sm:$0xff] }
 0x460   : > { %2073 = vpow2.f32 %v1008_v54 }
 0x461   : > { %1886 = vmatpush3.bf16.msra.mxu1 %v2056_v41 }
 0x462   : > { %1899 = vmatprep.subr.bf16.mxu1 %v2381_v6 }
 0x463   : > { %v1119_v55 = vpop.xlane.xlu0 %1118 }
 0x464   : > { %v1120_v56 = vsub.f32 %v1111_v37, %v1119_v55 }
 0x466   : > { %v1121_v57 = vmul.f32 1.442695, %v1120_v56 }
 0x468   : > { %2075 = vpow2.f32 %v1121_v57 }
 0x46a   : > { %v2074_v58 = vpop.eup %2073 }
 0x46b   : > { %v1010_v59 = vsel %vm844_vm7, %v2074_v58, 0.0  ;;  %v1229_v63 = vpop.xlane.xlu0 %1228 }
 0x46c   : > { %1011 = vadd.xlane.f32.xlu1 %v1010_v59  ;;  %v1230_v2 = vsub.f32 %v1221_v42, %v1229_v63  ;;  %v2057_v63 = vld [vmem:[%s2930_s9] sm:$0xff]  }
 0x46e   : > { %v1231_v4 = vmul.f32 1.442695, %v1230_v2  ;;  %v2060_v2 = vld [vmem:[%s2932_s11 + $0x8] sm:$0xff]  }
 0x472   : > { %v2076_v60 = vpop.eup %2075 }
 0x473   : > { %v1123_v61 = vsel %vm844_vm7, %v2076_v60, 0.0 }
 0x474   : > { %1124 = vadd.xlane.f32.xlu0 %v1123_v61 }
 0x47d   : > { %1129 = vrot.lane.b32.xlu1 %v1751_v62, %s2385_s28  ;;  %s560_s28 = sand.u32 1, %s2354_s30  }
 0x484   : > { %v899_v1 = vpop.xlane.xlu0 %898 }
 0x485   : > { %2077 = vrcp.f32 %v899_v1  ;;  %v2059_v1 = vld [vmem:[%s2932_s11] sm:$0xff]  }
 0x486   : > { %2079 = vpow2.f32 %v1231_v4 }
 0x48a   : > { %1019 = vrot.lane.b32.xlu0 %v1751_v62, %s2383_s17 }
 0x48f   : > { %v2078_v3 = vpop.eup %2077 }
 0x490   : > { %v901_v5 = vmul.f32 %v2078_v3, %v2072_v50  ;;  %v2080_v8 = vpop.eup %2079 }
 0x491   : > { %v1233_v9 = vsel %vm844_vm7, %v2080_v8, 0.0 }
 0x492   : > { %v902_v7 = vpack.c.bf16 %v901_v5, %v901_v5 }
 0x494   : > { %1844 = vmatmul.mubr.msk.bf16.vlgmr.msra.gmra.mrb[8].mxu0 %vm844_vm7, %v902_v7 }
 0x495   : > { %1855 = vmatprep.mubr.msk.bf16.mxu0 %vm2382_vm1, %v2381_v6 }
 0x4a1   : > { %1234 = vadd.xlane.f32.xlu1 %v1233_v9 }
 0x4b2   : > { %1239 = vrot.lane.b32.xlu1 %v1751_v62, %s2384_s0 }
 0x4f9   : > { %v1012_v10 = vpop.xlane.xlu1 %1011 }
 0x4fa   : > { %2081 = vrcp.f32 %v1012_v10 }
 0x4fd   : > { %v1130_v16 = vpop.permute.xlu1 %1129 }
 0x4fe   : > { %v1135_v18 = vsel %vm906_vm8, %v1130_v16, 0 }
 0x501   : > { %v1125_v11 = vpop.xlane.xlu0 %1124 }
 0x502   : > { %2083 = vrcp.f32 %v1125_v11 }
 0x504   : > { %v2082_v12 = vpop.eup %2081 }
 0x505   : > { %v1014_v13 = vmul.f32 %v2082_v12, %v2074_v58  ;;  %v1020_v14 = vpop.permute.xlu0 %1019 }
 0x506   : > { %v1025_v15 = vsel %vm906_vm8, %v1020_v14, 0 }
 0x507   : > { %1854 = vmatpush3.bf16.msra.mxu0 %v1025_v15  ;;  %v1015_v17 = vpack.c.bf16 %v1014_v13, %v1014_v13 }
 0x508   : > { %1865 = vmatprep.subr.bf16.mxu0 %v2381_v6 }
 0x50a   : > { %1856 = vmatmul.mubr.msk.bf16.vlgmr.msra.gmra.mrb[12].mxu0 %vm844_vm7, %v1015_v17 }
 0x50b   : > { %1866 = vmatpush3.bf16.msra.mxu0 %v1135_v18  ;;  %1867 = vmatprep.mubr.msk.bf16.mxu0 %vm2382_vm1, %v2381_v6 }
 0x50c   : > { %v2084_v19 = vpop.eup %2083  ;;  %1877 = vmatprep.subr.bf16.mxu0 %v2381_v6 }
 0x50d   : > { %v1127_v20 = vmul.f32 %v2084_v19, %v2076_v60  ;;  %v1395_v19 = vstv %s1733_s6  ;;  %s2389_s6 = smov [#allocation17]  }
 0x50f   : > { %v1128_v21 = vpack.c.bf16 %v1127_v20, %v1127_v20 }
 0x512   : > { %1868 = vmatmul.mubr.msk.bf16.vlgmr.msra.gmra.mrb[16].mxu0 %vm844_vm7, %v1128_v21 }
 0x513   : > { %1879 = vmatprep.mubr.msk.bf16.mxu0 %vm2382_vm1, %v2381_v6 }
 0x52e   : > { %v1235_v22 = vpop.xlane.xlu1 %1234 }
 0x52f   : > { %2085 = vrcp.f32 %v1235_v22  ;;  %v1398_v22 = vstv %s1734_s27  ;;  %s2276_s27 = sshll.u32 %s2389_s6, 4  ;;  %s2277_s27 = int_to_ptr.vmem [resolvable:$false] %s2276_s27 }
 0x530   : > { %s2278_s22 = scalar_lea.vmem %s2277_s27, 256 }
 0x532   : > { %v1240_v23 = vpop.permute.xlu1 %1239 }
 0x533   : > { %v1245_v24 = vsel %vm906_vm8, %v1240_v23, 0 }
 0x534   : > { %1878 = vmatpush3.bf16.msra.mxu0 %v1245_v24 }
 0x535   : > { %1891 = vmatprep.subr.bf16.mxu0 %v2381_v6 }
 0x539   : > { %v2086_v25 = vpop.eup %2085 }
 0x53a   : > { %v1237_v26 = vmul.f32 %v2086_v25, %v2080_v8 }
 0x53c   : > { %v1238_v27 = vpack.c.bf16 %v1237_v26, %v1237_v26  ;;  %v2061_v26 = vld [vmem:[%s2932_s11 + $0x10] sm:$0xff]  }
 0x53e   : > { %1880 = vmatmul.mubr.msk.bf16.vlgmr.msra.gmra.mrb[20].mxu0 %vm844_vm7, %v1238_v27  ;;  %v2062_v27 = vld [vmem:[%s2932_s11 + $0x18] sm:$0xff]  }
 0x53f   : > { %1895 = vmatprep.mubr.msk.bf16.mxu0 %vm2382_vm1, %v2381_v6  ;;  %1892 = vmatpush3.bf16.msra.mxu0 %v2057_v63 }
 0x540   : > { %1893 = vmatprep.subr.bf16.mxu0 %v2381_v6 }
 0x567   : > { %v944_v28 = vpop.f32.mrb[8].mxu0 }
 0x568   : > { %v1845_v29 = vpop.f32.mrb[9].mxu0 }
 0x569   : > { %v947_v30 = vpop.f32.mrb[10].mxu0 }
 0x56a   : > { %v1846_v31 = vpop.f32.mrb[11].mxu0 }
 0x5dd   : > { %v1061_v33 = vpop.f32.mrb[12].mxu0 }
 0x5de   : > { %1288 = vrot.lane.b32.xlu1 %v1061_v33, %s2386_s4  ;;  %v1857_v34 = vpop.f32.mrb[13].mxu0  ;;  %s1730_s4 = sshll.u32 %s560_s28, 3 }
 0x5df   : > { %v1064_v35 = vpop.f32.mrb[14].mxu0  ;;  %s562_s24 = scalar_lea.vmem [#allocation17], %s1730_s4 }
 0x5e0   : > { %v1858_v36 = vpop.f32.mrb[15].mxu0  ;;  %s1569_s14 = sshll.u32 %s562_s24, 4  ;;  %s2875_s14 = int_to_ptr.vmem [resolvable:$true] %s1569_s14 }
 0x5e1   : > { %v1765_v36 = vld [vmem:[#allocation15] ss:$0 sm:$0xff]  ;;  %s2272_s25 = scalar_lea.vmem %s2875_s14, 128  ;;  %p2279_p9 = scmp.lt.s32.totalorder %s2875_s14, %s2277_s27 }
 0x5e2   : > { %p2273_p3 = scmp.ne.s32.totalorder %s2875_s14, %s2272_s25  ;;  %p2280_p12 = scmp.lt.s32.totalorder %s2278_s22, %s2272_s25 }
 0x5e4   : > { %p2281_p0 = por %p2280_p12, %p2279_p9 }
 0x5e5   : > { %v1171_v37 = vpop.f32.mrb[16].mxu0 }
 0x5e6   : > { %1292 = vrot.lane.b32.xlu0 %v1171_v37, %s2387_s26  ;;  %v1869_v38 = vpop.f32.mrb[17].mxu0  ;;  %s2973_s26 = sld [smem:[#allocation29_spill]] }
 0x5e7   : > { %v1174_v39 = vpop.f32.mrb[18].mxu0 }
 0x5e8   : > { %v1870_v40 = vpop.f32.mrb[19].mxu0 }
 0x5ec   : > { %p2976_p5 = scmp.ne.s32.totalorder %s2973_s26, 0 }
 0x5ee   : > { %p2274_p6 = pnand %p2273_p3, %p2976_p5 }
 0x5f0   : > { %p2275_p7 = pneg %p2274_p6 }
 0x5f2   : > { %p2282_p2 = pnand %p2281_p0, %p2275_p7 }
 0x611   : > { %v1281_v42 = vpop.f32.mrb[20].mxu0 }
 0x612   : > { %1296 = vrot.lane.b32.xlu1 %v1281_v42, %s2388_s29  ;;  %v1881_v43 = vpop.f32.mrb[21].mxu0  ;;  %s1772_s29 = sshll.u32 %s2362_s16, 7  ;;  %s1555_s16 = scalar_lea.sflag [#allocation6], %s560_s28 }
 0x613   : > { %v1284_v44 = vpop.f32.mrb[22].mxu0  ;;  %s2873_s18 = scalar_lea.hbm %s2974_s15, %s1772_s29 }
 0x614   : > { %v1882_v45 = vpop.f32.mrb[23].mxu0 }
 0x650   : > { %v1289_v46 = vpop.permute.xlu1 %1288 }
 0x651   : > { %v1299_v48 = vsel %vm844_vm7, %v944_v28, %v1289_v46  ;;  %v1761_v28 = vld [vmem:[#allocation14] ss:$0 sm:$0xff] }
 0x658   : > { %v1293_v47 = vpop.permute.xlu0 %1292 }
 0x659   : > { %v1301_v49 = vsel %vm1300_vm9, %v1299_v48, %v1293_v47 }
 0x684   : > { %v1297_v50 = vpop.permute.xlu1 %1296 }
 0x685   : > { %v1303_v51 = vsel %vm1302_vm10, %v1301_v49, %v1297_v50 }
 0x686   : > { %v1304_v52 = vpack.c.bf16 %v1303_v51, %v1303_v51 }
 0x688   : > { %1888 = vmatmul.mubr.msk.bf16.vlgmr.msra.gmra.mrb[20].mxu1 %vm577_vm0, %v1304_v52 }
 0x689   : > { %1907 = vmatprep.mubr.msk.bf16.mxu1 %vm2382_vm1, %v2381_v6  ;;  %1900 = vmatpush3.bf16.msra.mxu1 %v2059_v1 }
 0x68a   : > { %1901 = vmatprep.subr.bf16.mxu1 %v2381_v6 }
 0x68d   : > { %1902 = vmatpush3.bf16.msra.mxu1 %v2060_v2 }
 0x68e   : > { %1903 = vmatprep.subr.bf16.mxu1 %v2381_v6 }
 0x691   : > { %1904 = vmatpush3.bf16.msra.mxu1 %v2061_v26 }
 0x692   : > { %1905 = vmatprep.subr.bf16.mxu1 %v2381_v6 }
 0x695   : > { %1906 = vmatpush3.bf16.msra.mxu1 %v2062_v27 }
 0x75b   : > { %v1365_v54 = vpop.f32.mrb[20].mxu1 }
 0x75c   : > { %v1366_v55 = vadd.f32 %v1757_v53, %v1365_v54  ;;  %v1889_v56 = vpop.f32.mrb[21].mxu1 }
 0x75d   : > { %v1368_v57 = vpop.f32.mrb[22].mxu1 }
 0x75e   : > { %v2836_v58 = vadd.f32 %v1366_v55, %v2716_v0  ;;  %v1890_v59 = vpop.f32.mrb[23].mxu1  ;;  %v2058_v0 = vld [vmem:[%s2930_s9 + $0x8] sm:$0xff]  }
 0x75f   : > { %1894 = vmatpush3.bf16.msra.mxu0 %v2058_v0 }
 0x760   : > { %v1372_v60 = vsel %vm577_vm0, %v2836_v58, 0.0  ;;  %v1375_v61 = vmul.f32 %v2836_v58, %v2836_v58 }
 0x761   : > { %1373 = vadd.xlane.f32.xlu0 %v1372_v60 }
 0x762   : > { %v1376_v62 = vsel %vm577_vm0, %v1375_v61, 0.0 }
 0x763   : > { %1377 = vadd.xlane.f32.xlu1 %v1376_v62 }
 0x7ee   : > { %v1374_v3 = vpop.xlane.xlu0 %1373 }
 0x7ef   : > { %v1379_v4 = vmul.f32 0.03125, %v1374_v3 }
 0x7f0   : > { %v1378_v8 = vpop.xlane.xlu1 %1377 }
 0x7f1   : > { %v1380_v5 = vmul.f32 32.0, %v1379_v4  ;;  %v1394_v18 = vsub.f32 %v2836_v58, %v1379_v4 }
 0x7f3   : > { %v1381_v7 = vmul.f32 %v1380_v5, %v1379_v4  ;;  %v1396_v20 = vmul.f32 %v1395_v19, %v1394_v18 }
 0x7f5   : > { %v1382_v9 = vsub.f32 %v1378_v8, %v1381_v7 }
 0x7f7   : > { %v1383_v10 = vmul.f32 0.032258064, %v1382_v9 }
 0x7f9   : > { %v1384_v11 = vmax.f32 %v1383_v10, 0.0 }
 0x7fb   : > { %2087 = vrsqrt.f32 %v1384_v11  ;;  %vm1387_vm11 = vcmp.eq.f32.partialorder %v1384_v11, inf  ;;  %v1390_v14 = vand.u32 2147483648, %v1384_v11  ;;  %vm1389_vm12 = vcmp.eq.f32.partialorder %v1384_v11, 0.0 }
 0x805   : > { %v2088_v12 = vpop.eup %2087 }
 0x806   : > { %v1386_v13 = vmul.f32 %v2088_v12, %v1384_v11 }
 0x808   : > { %v1388_v15 = vsel %vm1387_vm11, %v1384_v11, %v1386_v13 }
 0x809   : > { %v1391_v16 = vsel %vm1389_vm12, %v1390_v14, %v1388_v15 }
 0x80a   : > { %v1392_v17 = vadd.f32 1e-06, %v1391_v16 }
 0x80c   : > { %2089 = vrcp.f32 %v1392_v17 }
 0x816   : > { %v2090_v21 = vpop.eup %2089 }
 0x817   : > { %v1397_v23 = vmul.f32 %v2090_v21, %v1396_v20 }
 0x819   : > { %v1399_v24 = vadd.f32 %v1398_v22, %v1397_v23 }
 0x81b   : > { %v1400_v25 = vpack.c.bf16 %v1399_v24, %v1399_v24 }
 0x81d   : > { %1896 = vmatmul.mubr.msk.bf16.vlgmr.msra.gmra.mrb[24].mxu0 %vm577_vm0, %v1400_v25 }
 0x8f0   : > { %v1461_v29 = vpop.f32.mrb[24].mxu0 }
 0x8f1   : > { %v1462_v30 = vadd.f32 %v1761_v28, %v1461_v29  ;;  %v1897_v31 = vpop.f32.mrb[25].mxu0 }
 0x8f2   : > { %v1464_v32 = vpop.f32.mrb[26].mxu0 }
 0x8f3   : > { %v1467_v33 = vmax.f32 %v1462_v30, 0.0  ;;  %v1898_v34 = vpop.f32.mrb[27].mxu0 }
 0x8f5   : > { %v1468_v35 = vpack.c.bf16 %v1467_v33, %v1467_v33 }
 0x8f7   : > { %1908 = vmatmul.mubr.msk.bf16.vlgmr.msra.gmra.mrb[24].mxu1 %vm1508_vm13, %v1468_v35 }
 0x9ca   : > { %v1546_v6 = vpop.f32.mrb[24].mxu1 }
 0x9cb   : > { %v1547_v37 = vadd.f32 %v1765_v36, %v1546_v6  ;;  %v1909_v38 = vpop.f32.mrb[25].mxu1 }
 0x9cc   : > { %v1549_v39 = vpop.f32.mrb[26].mxu1 }
 0x9cd   : > { %v1552_v40 = vadd.f32 %v1547_v37, %v2836_v58  ;;  %v1910_v41 = vpop.f32.mrb[27].mxu1 }
 0x9cf   : > { %1553 = vst.msk [vmem:[%s562_s24] sm:$0xff] %vm577_vm0, %v1552_v40 }
 0x9d0   : > { %2285 = shalt.err (!%p2282_p2)
}
 0x9d1   : > { %s2286_s20 = scalar_lea.hbm %s2873_s18, 128  ;;  %s2290_s28 = scalar_lea.hbm %s2975_s21, 256 }
 0x9d2   : > { %p2287_p4 = scmp.ne.s32.totalorder %s2873_s18, %s2286_s20  ;;  %p2291_p11 = scmp.lt.u32.totalorder %s2873_s18, %s2975_s21 }
 0x9d3   : > { %p2292_p1 = scmp.lt.u32.totalorder %s2290_s28, %s2286_s20  ;;  %p2294_p3 = scmp.lt.u32.totalorder %s2286_s20, %s2873_s18 }
 0x9d4   : > { %p2288_p8 = pnand %p2287_p4, %p2976_p5 }
 0x9d5   : > { %p2293_p13 = por %p2292_p1, %p2291_p11 }
 0x9d6   : > { %p2289_p10 = pneg %p2288_p8 }
 0x9d7   : > { %p2295_p6 = por %p2294_p3, %p2293_p13 }
 0x9d9   : > { %p2296_p7 = pnand %p2295_p6, %p2289_p10 }
 0x9db   : > { %2299 = shalt.err (!%p2296_p7)
}
 0x9dc   : > { %1939 = dma.vmem_to_hbm [thread:$0]  (%p2976_p5), %s2875_s14, 128, %s2873_s18, %s1555_s16  }
 0x9dd PF: > { %s2977_s24 = sld [smem:[#allocation27_spill]]  ;;  %s2978_s23 = sld [smem:[#allocation24_spill]] }
 0x9de   : > { %s2979_s19 = sld [smem:[#allocation30_spill]] }
 0x9e3   : > { %p1981_p9 = scmp.ge.s32.totalorder %s2977_s24, 2  ;;  %s1581_s15 = sand.u32 1, %s2978_s23  }
 0x9e4   : > { %p2980_p12 = scmp.ne.s32.totalorder %s2979_s19, 0  ;;  %s1582_s25 = scalar_lea.sflag [#allocation6], %s1581_s15 }
 0x9e6   : > { %p1964_p0 = pnand %p1981_p9, %p2980_p12 }
 0x9e8   : > { %2345 = dma.done.wait (!%p1964_p0), %s1582_s25, 128  }
 0x9e9   : > { %2347 = vsyncadd (!%p1964_p0), %s1582_s25, 4294967168  ;;  %s32_s18 = sadd.s32 1, %s2977_s24   ;;  %s2981_s6 = sld [smem:[#allocation25_spill]] }
 0x9ea   : > { %p29_p2 = scmp.ge.s32.totalorder %s32_s18, 4   ;;  %s2982_s15 = sld [smem:[#allocation31_spill]] }
 0x9eb   : > { %s2983_s16 = sld [smem:[#allocation26_spill]]  ;;  %s2984_s17 = sld [smem:[#allocation28_spill]] }
 0x9ec   : > { %s2985_s29 = smov %s2354_s30  ;;  %31 = sbr.rel (!%p29_p2) target bundleno = 14 (0xe), region = 146 }
 0x9ef   : > { %s2986_s30 = smov %s2981_s6 }
 0x9f3   :  { %1587 = vsyncpa [#allocation5], 1 }
 0x9f4   :  { %1589 = vsyncpa [#allocation5 + $0x1], 1 }
 0x9f5   :  { %1590 = vsyncpa [#allocation10], 1 }
 0x9f6   :  { %1591 = vsyncpa [#allocation13], 1 }
 0x9f7   :  { %1592 = vsyncpa [#allocation16], 1 }
 0x9f8   :  { %1593 = vsyncpa [#allocation6], 1 }
 0x9f9   :  { %1595 = vsyncpa [#allocation6 + $0x1], 1 }
 0x9fa   :  { %1596 = vsyncpa [#allocation7], 1 }
 0x9fb   :  { %1598 = vsyncpa [#allocation7 + $0x1], 1 }

</bundles_post_ra>
